<compile_context>
chip_gen: v6e
topology: v6e:2x2x1
jax: 0.10.0
libtpu: 0.0.40
codegen_flags: <defaults>
</compile_context>

<pallas_src>
import jax
import jax.numpy as jnp
from jax import lax
from jax.experimental import pallas as pl
from jax.experimental.pallas import tpu as pltpu


LANE = 128  # TPU lane width; Cout is zero-padded to a multiple of this.


def _pick_row_tile(ho, k):
    """Largest conv-output-row tile that divides Ho while keeping the static
    unroll (tile_rows * k MXU dots per grid step) bounded."""
    cap = max(1, 96 // max(k, 1))
    for th in range(min(ho, cap), 0, -1):
        if ho % th == 0:
            return th
    return 1


# ----------------------------------------------------------------------------
# Pass 1: conv rows for one (image, row-tile) + per-tile BN partial sums.
# ----------------------------------------------------------------------------
def _make_conv_stats_kernel(k, s, th):
    def kernel(slab_ref, w_ref, conv_ref, sum_ref, ssq_ref):
        # slab_ref : (rows_in, Wo, k*Cin) bf16  (W-direction im2col already done)
        # w_ref    : (k, k*Cin, Cpad)     bf16  (resident across the whole grid)
        # conv_ref : (th, Wo, Cpad)       bf16  (lane-dense inter-pass tensor)
        # sum_ref / ssq_ref : (1, Cpad)   f32   (per-tile BatchNorm partials)
        wo, cpad = conv_ref.shape[1], conv_ref.shape[2]
        acc_sum = jnp.zeros((wo, cpad), jnp.float32)
        acc_ssq = jnp.zeros((wo, cpad), jnp.float32)
        for r in range(th):                      # static unroll: th*k small dots
            row = jnp.dot(slab_ref[r * s], w_ref[0],
                          preferred_element_type=jnp.float32)
            for kh in range(1, k):
                row = row + jnp.dot(slab_ref[r * s + kh], w_ref[kh],
                                    preferred_element_type=jnp.float32)
            conv_ref[r] = row.astype(conv_ref.dtype)   # bf16 store; f32 kept below
            acc_sum = acc_sum + row
            acc_ssq = acc_ssq + row * row
        # Channel reductions on the MXU (frees the VALU/XLU slots).
        ones = jnp.ones((1, wo), jnp.float32)
        sum_ref[...] = jnp.dot(ones, acc_sum, preferred_element_type=jnp.float32)
        ssq_ref[...] = jnp.dot(ones, acc_ssq, preferred_element_type=jnp.float32)

    return kernel


# ----------------------------------------------------------------------------
# Pass 2: folded BatchNorm + ReLU + fused MaxPool2d(kernel=3, stride=2, pad=1).
# ----------------------------------------------------------------------------
def _make_bn_pool_kernel(ho, wo, ho2, wo2):
    jhi = min(wo2, (wo - 2) // 2 + 1)   # out cols whose right (w+1) tap is in range
    n_odd = max(jhi, wo2 - 1)           # odd source columns actually needed

    def kernel(x_ref, scale_ref, shift_ref, out_ref, y_ref):
        # x_ref : (Ho, Wo, Cpad) bf16; scale/shift: (1, Cpad) f32
        # out_ref: (Ho2, Wo2, Cpad) f32; y_ref: VMEM (Ho+2, Wo, Cpad) f32 scratch.
        cpad = x_ref.shape[-1]
        # Folded BatchNorm (global-stat scale/shift) + ReLU, computed once.
        y = jnp.maximum(
            x_ref[...].astype(jnp.float32) * scale_ref[...] + shift_ref[...], 0.0)

        # H-only padded scratch: zero just the two halo rows (post-ReLU values
        # are >= 0, so zero == the pool's -inf padding).  W stays aligned (no
        # sublane-offset store); the +1 row offset is on the untiled H axis.
        zrow = jnp.zeros((1, wo, cpad), jnp.float32)
        y_ref[0:1] = zrow
        y_ref[ho + 1:ho + 2] = zrow
        y_ref[1:ho + 1] = y

        def three_row_max(col_start, n_cols):
            m = y_ref[pl.ds(0, ho2, stride=2),
                      pl.ds(col_start, n_cols, stride=2), :]
            m = jnp.maximum(m, y_ref[pl.ds(1, ho2, stride=2),
                                     pl.ds(col_start, n_cols, stride=2), :])
            m = jnp.maximum(m, y_ref[pl.ds(2, ho2, stride=2),
                                     pl.ds(col_start, n_cols, stride=2), :])
            return m

        # Separable 3x3/s2 pool: even source columns (the always-valid centre
        # tap) first, then the odd source columns feed both the w-1 / w+1 taps.
        out_ref[...] = three_row_max(0, wo2)
        if n_odd > 0:
            odd = three_row_max(1, n_odd)
            if jhi > 0:
                out_ref[:, :jhi, :] = jnp.maximum(out_ref[:, :jhi, :],
                                                  odd[:, :jhi, :])
            if wo2 > 1:
                out_ref[:, 1:wo2, :] = jnp.maximum(out_ref[:, 1:wo2, :],
                                                   odd[:, :wo2 - 1, :])

    return kernel


# ----------------------------------------------------------------------------
# Wrapper
# ----------------------------------------------------------------------------
class ResNetGatePallas:
    """Pallas TPU implementation of ResNetGate.forward (conv->bn->relu->maxpool)."""

    def __init__(self, in_channels, out_channels, kernel_size, stride, key):
        self.in_channels = in_channels
        self.out_channels = out_channels
        self.kernel_size = kernel_size
        self.stride = stride
        self.padding = kernel_size // 2            # Conv2dAuto
        self.eps = 1e-5                            # nn.BatchNorm2d default

        k1, k2, k3 = jax.random.split(key, 3)
        fan_in = in_channels * kernel_size * kernel_size
        # Conv2d weight (Cout, Cin, K, K), bias=False.
        self.weight = jax.random.normal(
            k1, (out_channels, in_channels, kernel_size, kernel_size),
            jnp.float32) / jnp.sqrt(float(fan_in))
        # BatchNorm affine parameters (deterministic, non-trivial).
        self.gamma = 1.0 + 0.1 * jax.random.normal(k2, (out_channels,), jnp.float32)
        self.beta = 0.1 * jax.random.normal(k3, (out_channels,), jnp.float32)

    def __call__(self, x_nchw):
        n, cin, h, w = x_nchw.shape
        k, s, p = self.kernel_size, self.stride, self.padding
        cout = self.out_channels
        cpad = ((cout + LANE - 1) // LANE) * LANE
        kcin = k * cin

        # NCHW -> NHWC bf16 (MXU inputs), zero-pad spatially.
        x = jnp.transpose(x_nchw, (0, 2, 3, 1)).astype(jnp.bfloat16)
        x_pad = jnp.pad(x, ((0, 0), (p, p), (p, p), (0, 0)))
        hp, wp = h + 2 * p, w + 2 * p
        ho = (h + 2 * p - k) // s + 1
        wo = (w + 2 * p - k) // s + 1

        # W-direction im2col only (k-fold duplication of the *small* conv
        # input); the H direction is resolved in-kernel from a row slab, so the
        # big (M, K*K*Cin) im2col matrix never touches HBM.
        cols_w = jnp.stack(
            [lax.slice(x_pad, (0, 0, kw, 0),
                       (n, hp, kw + s * (wo - 1) + 1, cin), (1, 1, s, 1))
             for kw in range(k)], axis=3)                    # (N, Hp, Wo, k, Cin)
        cols_w = cols_w.reshape(n, hp, wo, kcin)

        # Overlapping conv-row slabs: only a (k - s)-row halo per tile is
        # duplicated (tiny vs. the old K*K amplification).
        th = _pick_row_tile(ho, k)
        n_ht = ho // th
        rows_in = (th - 1) * s + k
        slabs = jnp.stack(
            [lax.slice(cols_w, (0, t * th * s, 0, 0),
                       (n, t * th * s + rows_in, wo, kcin))
             for t in range(n_ht)], axis=1)                  # (N, n_ht, rows_in, Wo, kCin)
        slabs = slabs.reshape(n * n_ht, rows_in, wo, kcin)

        # Weights (Cout,Cin,K,K) -> (K, K*Cin, Cpad): (kw, ci) folded into the
        # contraction, Cout zero-padded to the lane width (kept at 128: the
        # kernel is HBM-bound, wider Cpad would only add traffic).
        w3 = jnp.transpose(self.weight, (2, 3, 1, 0)).reshape(k, kcin, cout)
        w3 = jnp.pad(w3, ((0, 0), (0, 0), (0, cpad - cout))).astype(jnp.bfloat16)

        conv, sums, ssqs = pl.pallas_call(
            _make_conv_stats_kernel(k, s, th),
            out_shape=(
                jax.ShapeDtypeStruct((n, ho, wo, cpad), jnp.bfloat16),
                jax.ShapeDtypeStruct((n * n_ht, 1, cpad), jnp.float32),
                jax.ShapeDtypeStruct((n * n_ht, 1, cpad), jnp.float32),
            ),
            grid=(n, n_ht),
            in_specs=[
                pl.BlockSpec((None, rows_in, wo, kcin),
                             lambda b, t: (b * n_ht + t, 0, 0, 0)),
                pl.BlockSpec((k, kcin, cpad), lambda b, t: (0, 0, 0)),
            ],
            out_specs=(
                pl.BlockSpec((None, th, wo, cpad), lambda b, t: (b, t, 0, 0)),
                pl.BlockSpec((None, 1, cpad), lambda b, t: (b * n_ht + t, 0, 0)),
                pl.BlockSpec((None, 1, cpad), lambda b, t: (b * n_ht + t, 0, 0)),
            ),
            compiler_params=pltpu.CompilerParams(
                dimension_semantics=("parallel", "parallel")),
        )(slabs, w3)

        # Two-pass BatchNorm: global batch stats (biased variance) from the
        # per-tile partials, folded into per-channel scale/shift (tiny XLA op).
        m_count = float(n * ho * wo)
        mean = jnp.sum(sums, axis=(0, 1)) / m_count
        # TODO(synk): E[x^2]-E[x]^2 can lose precision for extreme channel
        # means; a centred second pass would be safer for strict parity.
        var = jnp.maximum(jnp.sum(ssqs, axis=(0, 1)) / m_count - mean * mean, 0.0)
        gamma = jnp.pad(self.gamma, (0, cpad - cout))
        beta = jnp.pad(self.beta, (0, cpad - cout))
        scale = gamma * lax.rsqrt(var + self.eps)
        shift = beta - mean * scale

        # MaxPool2d(kernel=3, stride=2, padding=1) output extents.
        ho2 = (ho - 1) // 2 + 1
        wo2 = (wo - 1) // 2 + 1

        # Explicit scoped-VMEM request so the same whole-image pass-2 blocking
        # works on v5e (16 MiB default scoped) and v7x (64 MiB physical).
        p2_need = (2 * ho * wo * cpad * 2          # conv input blocks (bf16, x2 buf)
                   + (ho + 2) * wo * cpad * 4      # y scratch (f32)
                   + 2 * ho2 * wo2 * cpad * 4      # output blocks (f32, x2 buf)
                   + (2 << 20))
        p2_vmem = int(min(max(p2_need, 32 << 20), 48 << 20))

        pooled = pl.pallas_call(
            _make_bn_pool_kernel(ho, wo, ho2, wo2),
            out_shape=jax.ShapeDtypeStruct((n, ho2, wo2, cpad), jnp.float32),
            grid=(n,),
            in_specs=[
                pl.BlockSpec((None, ho, wo, cpad), lambda b: (b, 0, 0, 0)),
                pl.BlockSpec((1, cpad), lambda b: (0, 0)),
                pl.BlockSpec((1, cpad), lambda b: (0, 0)),
            ],
            out_specs=pl.BlockSpec((None, ho2, wo2, cpad), lambda b: (b, 0, 0, 0)),
            scratch_shapes=[pltpu.VMEM((ho + 2, wo, cpad), jnp.float32)],
            compiler_params=pltpu.CompilerParams(
                dimension_semantics=("parallel",),
                vmem_limit_bytes=p2_vmem),
        )(conv, scale.reshape(1, cpad), shift.reshape(1, cpad))

        out = pooled[..., :cout]                 # drop lane padding
        return jnp.transpose(out, (0, 3, 1, 2))  # back to NCHW


# ----------------------------------------------------------------------------
# Pure-JAX reference (same bf16 MXU inputs, f32 accumulate / f32 statistics)
# ----------------------------------------------------------------------------
def _reference(x_nchw, weight, gamma, beta, eps, stride, padding):
    y = lax.conv_general_dilated(
        x_nchw.astype(jnp.bfloat16), weight.astype(jnp.bfloat16),
        (stride, stride), [(padding, padding), (padding, padding)],
        dimension_numbers=("NCHW", "OIHW", "NCHW"),
        preferred_element_type=jnp.float32)
    mean = jnp.mean(y, axis=(0, 2, 3), keepdims=True)
    var = jnp.mean(jnp.square(y - mean), axis=(0, 2, 3), keepdims=True)
    y = (y - mean) * lax.rsqrt(var + eps)
    y = y * gamma[None, :, None, None] + beta[None, :, None, None]
    y = jnp.maximum(y, 0.0)
    y = lax.reduce_window(y, -jnp.inf, lax.max,
                          (1, 1, 3, 3), (1, 1, 2, 2),
                          ((0, 0), (0, 0), (1, 1), (1, 1)))
    return y


if __name__ == "__main__":
    key = jax.random.PRNGKey(0)
    kx, kp = jax.random.split(key)

    # Small shapes consistent with the module: N=2, Cin=4, H=W=16, Cout=8, k=3, s=2.
    N, CIN, H, W = 2, 4, 16, 16
    COUT, K, STRIDE = 8, 3, 2

    x = jax.random.normal(kx, (N, CIN, H, W), jnp.float32)
    gate = ResNetGatePallas(CIN, COUT, K, STRIDE, kp)

    out = gate(x)
    out = jax.block_until_ready(out)

    ref = _reference(x, gate.weight, gate.gamma, gate.beta, gate.eps,
                     STRIDE, gate.padding)
    assert out.shape == ref.shape, (out.shape, ref.shape)
    # Tolerance accounts for the bf16 inter-pass conv tensor + MXU-reduced stats.
    assert jnp.allclose(out, ref, atol=3e-2, rtol=3e-2), \
        float(jnp.max(jnp.abs(out - ref)))

    print("KERNEL_OK")
</pallas_src>

<mosaic_0001>
module attributes {stable_mosaic.version = 11 : i64} {
  func.func @kernel(%arg0: i32, %arg1: i32, %arg2: memref<1x17x8x12xbf16, #tpu.memory_space<vmem>>, %arg3: memref<3x12x128xbf16, #tpu.memory_space<vmem>>, %arg4: memref<1x8x8x128xbf16, #tpu.memory_space<vmem>>, %arg5: memref<1x1x128xf32, #tpu.memory_space<vmem>>, %arg6: memref<1x1x128xf32, #tpu.memory_space<vmem>>) attributes {dimension_semantics = [#tpu.dimension_semantics<parallel>, #tpu.dimension_semantics<parallel>], iteration_bounds = array<i64: 2, 1>, scalar_prefetch = 0 : i64, scratch_operands = 0 : i64, tpu.core_type = #tpu.core_type<tc>, window_params = [{transform_indices = @transform_0, window_bounds = array<i64: 1, 17, 8, 12>}, {pipeline_mode = #tpu.pipeline_mode<synchronous>, transform_indices = @transform_1, window_bounds = array<i64: 3, 12, 128>}, {transform_indices = @transform_2, window_bounds = array<i64: 1, 8, 8, 128>}, {transform_indices = @transform_3, window_bounds = array<i64: 1, 1, 128>}, {transform_indices = @transform_4, window_bounds = array<i64: 1, 1, 128>}]} {
    %cst = arith.constant 0.000000e+00 : f32
    %0 = vector.broadcast %cst : f32 to vector<8x128xf32>
    %cst_0 = arith.constant 0.000000e+00 : f32
    %1 = vector.broadcast %cst_0 : f32 to vector<8x128xf32>
    %c0 = arith.constant 0 : index
    %c0_1 = arith.constant 0 : index
    %c0_2 = arith.constant 0 : index
    %c0_3 = arith.constant 0 : index
    %2 = vector.load %arg2[%c0, %c0_1, %c0_2, %c0_3] : memref<1x17x8x12xbf16, #tpu.memory_space<vmem>>, vector<1x1x8x12xbf16>
    %3 = vector.shape_cast %2 : vector<1x1x8x12xbf16> to vector<8x12xbf16>
    %c0_4 = arith.constant 0 : index
    %c0_5 = arith.constant 0 : index
    %c0_6 = arith.constant 0 : index
    %4 = vector.load %arg3[%c0_4, %c0_5, %c0_6] : memref<3x12x128xbf16, #tpu.memory_space<vmem>>, vector<1x12x128xbf16>
    %5 = vector.shape_cast %4 : vector<1x12x128xbf16> to vector<12x128xbf16>
    %cst_7 = arith.constant dense<0.000000e+00> : vector<8x128xf32>
    %6 = tpu.matmul %3, %5, %cst_7 {dimension_numbers = #tpu.dot_dimension_numbers<[1], [0], [0], [1], [0, 0, 1, 1], [], []>} : vector<8x12xbf16>, vector<12x128xbf16>, vector<8x128xf32> -> vector<8x128xf32>
    %c0_8 = arith.constant 0 : index
    %c1 = arith.constant 1 : index
    %c0_9 = arith.constant 0 : index
    %c0_10 = arith.constant 0 : index
    %7 = vector.load %arg2[%c0_8, %c1, %c0_9, %c0_10] : memref<1x17x8x12xbf16, #tpu.memory_space<vmem>>, vector<1x1x8x12xbf16>
    %8 = vector.shape_cast %7 : vector<1x1x8x12xbf16> to vector<8x12xbf16>
    %c1_11 = arith.constant 1 : index
    %c0_12 = arith.constant 0 : index
    %c0_13 = arith.constant 0 : index
    %9 = vector.load %arg3[%c1_11, %c0_12, %c0_13] : memref<3x12x128xbf16, #tpu.memory_space<vmem>>, vector<1x12x128xbf16>
    %10 = vector.shape_cast %9 : vector<1x12x128xbf16> to vector<12x128xbf16>
    %cst_14 = arith.constant dense<0.000000e+00> : vector<8x128xf32>
    %11 = tpu.matmul %8, %10, %cst_14 {dimension_numbers = #tpu.dot_dimension_numbers<[1], [0], [0], [1], [0, 0, 1, 1], [], []>} : vector<8x12xbf16>, vector<12x128xbf16>, vector<8x128xf32> -> vector<8x128xf32>
    %12 = arith.addf %6, %11 : vector<8x128xf32>
    %c0_15 = arith.constant 0 : index
    %c2 = arith.constant 2 : index
    %c0_16 = arith.constant 0 : index
    %c0_17 = arith.constant 0 : index
    %13 = vector.load %arg2[%c0_15, %c2, %c0_16, %c0_17] : memref<1x17x8x12xbf16, #tpu.memory_space<vmem>>, vector<1x1x8x12xbf16>
    %14 = vector.shape_cast %13 : vector<1x1x8x12xbf16> to vector<8x12xbf16>
    %c2_18 = arith.constant 2 : index
    %c0_19 = arith.constant 0 : index
    %c0_20 = arith.constant 0 : index
    %15 = vector.load %arg3[%c2_18, %c0_19, %c0_20] : memref<3x12x128xbf16, #tpu.memory_space<vmem>>, vector<1x12x128xbf16>
    %16 = vector.shape_cast %15 : vector<1x12x128xbf16> to vector<12x128xbf16>
    %cst_21 = arith.constant dense<0.000000e+00> : vector<8x128xf32>
    %17 = tpu.matmul %14, %16, %cst_21 {dimension_numbers = #tpu.dot_dimension_numbers<[1], [0], [0], [1], [0, 0, 1, 1], [], []>} : vector<8x12xbf16>, vector<12x128xbf16>, vector<8x128xf32> -> vector<8x128xf32>
    %18 = arith.addf %12, %17 : vector<8x128xf32>
    %19 = arith.truncf %18 : vector<8x128xf32> to vector<8x128xbf16>
    %c0_22 = arith.constant 0 : index
    %c0_23 = arith.constant 0 : index
    %c0_24 = arith.constant 0 : index
    %c0_25 = arith.constant 0 : index
    %20 = vector.load %arg4[%c0_22, %c0_23, %c0_24, %c0_25] : memref<1x8x8x128xbf16, #tpu.memory_space<vmem>>, vector<1x1x8x128xbf16>
    %21 = vector.shape_cast %20 : vector<1x1x8x128xbf16> to vector<8x128xbf16>
    %22 = vector.shape_cast %19 : vector<8x128xbf16> to vector<1x1x8x128xbf16>
    tpu.vector_store %arg4[%c0_22, %c0_23, %c0_24, %c0_25], %22 {strides = array<i32>} : memref<1x8x8x128xbf16, #tpu.memory_space<vmem>>, vector<1x1x8x128xbf16>,
    %23 = arith.addf %0, %18 : vector<8x128xf32>
    %24 = arith.mulf %18, %18 : vector<8x128xf32>
    %25 = arith.addf %1, %24 : vector<8x128xf32>
    %c0_26 = arith.constant 0 : index
    %c2_27 = arith.constant 2 : index
    %c0_28 = arith.constant 0 : index
    %c0_29 = arith.constant 0 : index
    %26 = vector.load %arg2[%c0_26, %c2_27, %c0_28, %c0_29] : memref<1x17x8x12xbf16, #tpu.memory_space<vmem>>, vector<1x1x8x12xbf16>
    %27 = vector.shape_cast %26 : vector<1x1x8x12xbf16> to vector<8x12xbf16>
    %c0_30 = arith.constant 0 : index
    %c0_31 = arith.constant 0 : index
    %c0_32 = arith.constant 0 : index
    %28 = vector.load %arg3[%c0_30, %c0_31, %c0_32] : memref<3x12x128xbf16, #tpu.memory_space<vmem>>, vector<1x12x128xbf16>
    %29 = vector.shape_cast %28 : vector<1x12x128xbf16> to vector<12x128xbf16>
    %cst_33 = arith.constant dense<0.000000e+00> : vector<8x128xf32>
    %30 = tpu.matmul %27, %29, %cst_33 {dimension_numbers = #tpu.dot_dimension_numbers<[1], [0], [0], [1], [0, 0, 1, 1], [], []>} : vector<8x12xbf16>, vector<12x128xbf16>, vector<8x128xf32> -> vector<8x128xf32>
    %c0_34 = arith.constant 0 : index
    %c3 = arith.constant 3 : index
    %c0_35 = arith.constant 0 : index
    %c0_36 = arith.constant 0 : index
    %31 = vector.load %arg2[%c0_34, %c3, %c0_35, %c0_36] : memref<1x17x8x12xbf16, #tpu.memory_space<vmem>>, vector<1x1x8x12xbf16>
    %32 = vector.shape_cast %31 : vector<1x1x8x12xbf16> to vector<8x12xbf16>
    %c1_37 = arith.constant 1 : index
    %c0_38 = arith.constant 0 : index
    %c0_39 = arith.constant 0 : index
    %33 = vector.load %arg3[%c1_37, %c0_38, %c0_39] : memref<3x12x128xbf16, #tpu.memory_space<vmem>>, vector<1x12x128xbf16>
    %34 = vector.shape_cast %33 : vector<1x12x128xbf16> to vector<12x128xbf16>
    %cst_40 = arith.constant dense<0.000000e+00> : vector<8x128xf32>
    %35 = tpu.matmul %32, %34, %cst_40 {dimension_numbers = #tpu.dot_dimension_numbers<[1], [0], [0], [1], [0, 0, 1, 1], [], []>} : vector<8x12xbf16>, vector<12x128xbf16>, vector<8x128xf32> -> vector<8x128xf32>
    %36 = arith.addf %30, %35 : vector<8x128xf32>
    %c0_41 = arith.constant 0 : index
    %c4 = arith.constant 4 : index
    %c0_42 = arith.constant 0 : index
    %c0_43 = arith.constant 0 : index
    %37 = vector.load %arg2[%c0_41, %c4, %c0_42, %c0_43] : memref<1x17x8x12xbf16, #tpu.memory_space<vmem>>, vector<1x1x8x12xbf16>
    %38 = vector.shape_cast %37 : vector<1x1x8x12xbf16> to vector<8x12xbf16>
    %c2_44 = arith.constant 2 : index
    %c0_45 = arith.constant 0 : index
    %c0_46 = arith.constant 0 : index
    %39 = vector.load %arg3[%c2_44, %c0_45, %c0_46] : memref<3x12x128xbf16, #tpu.memory_space<vmem>>, vector<1x12x128xbf16>
    %40 = vector.shape_cast %39 : vector<1x12x128xbf16> to vector<12x128xbf16>
    %cst_47 = arith.constant dense<0.000000e+00> : vector<8x128xf32>
    %41 = tpu.matmul %38, %40, %cst_47 {dimension_numbers = #tpu.dot_dimension_numbers<[1], [0], [0], [1], [0, 0, 1, 1], [], []>} : vector<8x12xbf16>, vector<12x128xbf16>, vector<8x128xf32> -> vector<8x128xf32>
    %42 = arith.addf %36, %41 : vector<8x128xf32>
    %43 = arith.truncf %42 : vector<8x128xf32> to vector<8x128xbf16>
    %c0_48 = arith.constant 0 : index
    %c1_49 = arith.constant 1 : index
    %c0_50 = arith.constant 0 : index
    %c0_51 = arith.constant 0 : index
    %44 = vector.load %arg4[%c0_48, %c1_49, %c0_50, %c0_51] : memref<1x8x8x128xbf16, #tpu.memory_space<vmem>>, vector<1x1x8x128xbf16>
    %45 = vector.shape_cast %44 : vector<1x1x8x128xbf16> to vector<8x128xbf16>
    %46 = vector.shape_cast %43 : vector<8x128xbf16> to vector<1x1x8x128xbf16>
    tpu.vector_store %arg4[%c0_48, %c1_49, %c0_50, %c0_51], %46 {strides = array<i32>} : memref<1x8x8x128xbf16, #tpu.memory_space<vmem>>, vector<1x1x8x128xbf16>,
    %47 = arith.addf %23, %42 : vector<8x128xf32>
    %48 = arith.mulf %42, %42 : vector<8x128xf32>
    %49 = arith.addf %25, %48 : vector<8x128xf32>
    %c0_52 = arith.constant 0 : index
    %c4_53 = arith.constant 4 : index
    %c0_54 = arith.constant 0 : index
    %c0_55 = arith.constant 0 : index
    %50 = vector.load %arg2[%c0_52, %c4_53, %c0_54, %c0_55] : memref<1x17x8x12xbf16, #tpu.memory_space<vmem>>, vector<1x1x8x12xbf16>
    %51 = vector.shape_cast %50 : vector<1x1x8x12xbf16> to vector<8x12xbf16>
    %c0_56 = arith.constant 0 : index
    %c0_57 = arith.constant 0 : index
    %c0_58 = arith.constant 0 : index
    %52 = vector.load %arg3[%c0_56, %c0_57, %c0_58] : memref<3x12x128xbf16, #tpu.memory_space<vmem>>, vector<1x12x128xbf16>
    %53 = vector.shape_cast %52 : vector<1x12x128xbf16> to vector<12x128xbf16>
    %cst_59 = arith.constant dense<0.000000e+00> : vector<8x128xf32>
    %54 = tpu.matmul %51, %53, %cst_59 {dimension_numbers = #tpu.dot_dimension_numbers<[1], [0], [0], [1], [0, 0, 1, 1], [], []>} : vector<8x12xbf16>, vector<12x128xbf16>, vector<8x128xf32> -> vector<8x128xf32>
    %c0_60 = arith.constant 0 : index
    %c5 = arith.constant 5 : index
    %c0_61 = arith.constant 0 : index
    %c0_62 = arith.constant 0 : index
    %55 = vector.load %arg2[%c0_60, %c5, %c0_61, %c0_62] : memref<1x17x8x12xbf16, #tpu.memory_space<vmem>>, vector<1x1x8x12xbf16>
    %56 = vector.shape_cast %55 : vector<1x1x8x12xbf16> to vector<8x12xbf16>
    %c1_63 = arith.constant 1 : index
    %c0_64 = arith.constant 0 : index
    %c0_65 = arith.constant 0 : index
    %57 = vector.load %arg3[%c1_63, %c0_64, %c0_65] : memref<3x12x128xbf16, #tpu.memory_space<vmem>>, vector<1x12x128xbf16>
    %58 = vector.shape_cast %57 : vector<1x12x128xbf16> to vector<12x128xbf16>
    %cst_66 = arith.constant dense<0.000000e+00> : vector<8x128xf32>
    %59 = tpu.matmul %56, %58, %cst_66 {dimension_numbers = #tpu.dot_dimension_numbers<[1], [0], [0], [1], [0, 0, 1, 1], [], []>} : vector<8x12xbf16>, vector<12x128xbf16>, vector<8x128xf32> -> vector<8x128xf32>
    %60 = arith.addf %54, %59 : vector<8x128xf32>
    %c0_67 = arith.constant 0 : index
    %c6 = arith.constant 6 : index
    %c0_68 = arith.constant 0 : index
    %c0_69 = arith.constant 0 : index
    %61 = vector.load %arg2[%c0_67, %c6, %c0_68, %c0_69] : memref<1x17x8x12xbf16, #tpu.memory_space<vmem>>, vector<1x1x8x12xbf16>
    %62 = vector.shape_cast %61 : vector<1x1x8x12xbf16> to vector<8x12xbf16>
    %c2_70 = arith.constant 2 : index
    %c0_71 = arith.constant 0 : index
    %c0_72 = arith.constant 0 : index
    %63 = vector.load %arg3[%c2_70, %c0_71, %c0_72] : memref<3x12x128xbf16, #tpu.memory_space<vmem>>, vector<1x12x128xbf16>
    %64 = vector.shape_cast %63 : vector<1x12x128xbf16> to vector<12x128xbf16>
    %cst_73 = arith.constant dense<0.000000e+00> : vector<8x128xf32>
    %65 = tpu.matmul %62, %64, %cst_73 {dimension_numbers = #tpu.dot_dimension_numbers<[1], [0], [0], [1], [0, 0, 1, 1], [], []>} : vector<8x12xbf16>, vector<12x128xbf16>, vector<8x128xf32> -> vector<8x128xf32>
    %66 = arith.addf %60, %65 : vector<8x128xf32>
    %67 = arith.truncf %66 : vector<8x128xf32> to vector<8x128xbf16>
    %c0_74 = arith.constant 0 : index
    %c2_75 = arith.constant 2 : index
    %c0_76 = arith.constant 0 : index
    %c0_77 = arith.constant 0 : index
    %68 = vector.load %arg4[%c0_74, %c2_75, %c0_76, %c0_77] : memref<1x8x8x128xbf16, #tpu.memory_space<vmem>>, vector<1x1x8x128xbf16>
    %69 = vector.shape_cast %68 : vector<1x1x8x128xbf16> to vector<8x128xbf16>
    %70 = vector.shape_cast %67 : vector<8x128xbf16> to vector<1x1x8x128xbf16>
    tpu.vector_store %arg4[%c0_74, %c2_75, %c0_76, %c0_77], %70 {strides = array<i32>} : memref<1x8x8x128xbf16, #tpu.memory_space<vmem>>, vector<1x1x8x128xbf16>,
    %71 = arith.addf %47, %66 : vector<8x128xf32>
    %72 = arith.mulf %66, %66 : vector<8x128xf32>
    %73 = arith.addf %49, %72 : vector<8x128xf32>
    %c0_78 = arith.constant 0 : index
    %c6_79 = arith.constant 6 : index
    %c0_80 = arith.constant 0 : index
    %c0_81 = arith.constant 0 : index
    %74 = vector.load %arg2[%c0_78, %c6_79, %c0_80, %c0_81] : memref<1x17x8x12xbf16, #tpu.memory_space<vmem>>, vector<1x1x8x12xbf16>
    %75 = vector.shape_cast %74 : vector<1x1x8x12xbf16> to vector<8x12xbf16>
    %c0_82 = arith.constant 0 : index
    %c0_83 = arith.constant 0 : index
    %c0_84 = arith.constant 0 : index
    %76 = vector.load %arg3[%c0_82, %c0_83, %c0_84] : memref<3x12x128xbf16, #tpu.memory_space<vmem>>, vector<1x12x128xbf16>
    %77 = vector.shape_cast %76 : vector<1x12x128xbf16> to vector<12x128xbf16>
    %cst_85 = arith.constant dense<0.000000e+00> : vector<8x128xf32>
    %78 = tpu.matmul %75, %77, %cst_85 {dimension_numbers = #tpu.dot_dimension_numbers<[1], [0], [0], [1], [0, 0, 1, 1], [], []>} : vector<8x12xbf16>, vector<12x128xbf16>, vector<8x128xf32> -> vector<8x128xf32>
    %c0_86 = arith.constant 0 : index
    %c7 = arith.constant 7 : index
    %c0_87 = arith.constant 0 : index
    %c0_88 = arith.constant 0 : index
    %79 = vector.load %arg2[%c0_86, %c7, %c0_87, %c0_88] : memref<1x17x8x12xbf16, #tpu.memory_space<vmem>>, vector<1x1x8x12xbf16>
    %80 = vector.shape_cast %79 : vector<1x1x8x12xbf16> to vector<8x12xbf16>
    %c1_89 = arith.constant 1 : index
    %c0_90 = arith.constant 0 : index
    %c0_91 = arith.constant 0 : index
    %81 = vector.load %arg3[%c1_89, %c0_90, %c0_91] : memref<3x12x128xbf16, #tpu.memory_space<vmem>>, vector<1x12x128xbf16>
    %82 = vector.shape_cast %81 : vector<1x12x128xbf16> to vector<12x128xbf16>
    %cst_92 = arith.constant dense<0.000000e+00> : vector<8x128xf32>
    %83 = tpu.matmul %80, %82, %cst_92 {dimension_numbers = #tpu.dot_dimension_numbers<[1], [0], [0], [1], [0, 0, 1, 1], [], []>} : vector<8x12xbf16>, vector<12x128xbf16>, vector<8x128xf32> -> vector<8x128xf32>
    %84 = arith.addf %78, %83 : vector<8x128xf32>
    %c0_93 = arith.constant 0 : index
    %c8 = arith.constant 8 : index
    %c0_94 = arith.constant 0 : index
    %c0_95 = arith.constant 0 : index
    %85 = vector.load %arg2[%c0_93, %c8, %c0_94, %c0_95] : memref<1x17x8x12xbf16, #tpu.memory_space<vmem>>, vector<1x1x8x12xbf16>
    %86 = vector.shape_cast %85 : vector<1x1x8x12xbf16> to vector<8x12xbf16>
    %c2_96 = arith.constant 2 : index
    %c0_97 = arith.constant 0 : index
    %c0_98 = arith.constant 0 : index
    %87 = vector.load %arg3[%c2_96, %c0_97, %c0_98] : memref<3x12x128xbf16, #tpu.memory_space<vmem>>, vector<1x12x128xbf16>
    %88 = vector.shape_cast %87 : vector<1x12x128xbf16> to vector<12x128xbf16>
    %cst_99 = arith.constant dense<0.000000e+00> : vector<8x128xf32>
    %89 = tpu.matmul %86, %88, %cst_99 {dimension_numbers = #tpu.dot_dimension_numbers<[1], [0], [0], [1], [0, 0, 1, 1], [], []>} : vector<8x12xbf16>, vector<12x128xbf16>, vector<8x128xf32> -> vector<8x128xf32>
    %90 = arith.addf %84, %89 : vector<8x128xf32>
    %91 = arith.truncf %90 : vector<8x128xf32> to vector<8x128xbf16>
    %c0_100 = arith.constant 0 : index
    %c3_101 = arith.constant 3 : index
    %c0_102 = arith.constant 0 : index
    %c0_103 = arith.constant 0 : index
    %92 = vector.load %arg4[%c0_100, %c3_101, %c0_102, %c0_103] : memref<1x8x8x128xbf16, #tpu.memory_space<vmem>>, vector<1x1x8x128xbf16>
    %93 = vector.shape_cast %92 : vector<1x1x8x128xbf16> to vector<8x128xbf16>
    %94 = vector.shape_cast %91 : vector<8x128xbf16> to vector<1x1x8x128xbf16>
    tpu.vector_store %arg4[%c0_100, %c3_101, %c0_102, %c0_103], %94 {strides = array<i32>} : memref<1x8x8x128xbf16, #tpu.memory_space<vmem>>, vector<1x1x8x128xbf16>,
    %95 = arith.addf %71, %90 : vector<8x128xf32>
    %96 = arith.mulf %90, %90 : vector<8x128xf32>
    %97 = arith.addf %73, %96 : vector<8x128xf32>
    %c0_104 = arith.constant 0 : index
    %c8_105 = arith.constant 8 : index
    %c0_106 = arith.constant 0 : index
    %c0_107 = arith.constant 0 : index
    %98 = vector.load %arg2[%c0_104, %c8_105, %c0_106, %c0_107] : memref<1x17x8x12xbf16, #tpu.memory_space<vmem>>, vector<1x1x8x12xbf16>
    %99 = vector.shape_cast %98 : vector<1x1x8x12xbf16> to vector<8x12xbf16>
    %c0_108 = arith.constant 0 : index
    %c0_109 = arith.constant 0 : index
    %c0_110 = arith.constant 0 : index
    %100 = vector.load %arg3[%c0_108, %c0_109, %c0_110] : memref<3x12x128xbf16, #tpu.memory_space<vmem>>, vector<1x12x128xbf16>
    %101 = vector.shape_cast %100 : vector<1x12x128xbf16> to vector<12x128xbf16>
    %cst_111 = arith.constant dense<0.000000e+00> : vector<8x128xf32>
    %102 = tpu.matmul %99, %101, %cst_111 {dimension_numbers = #tpu.dot_dimension_numbers<[1], [0], [0], [1], [0, 0, 1, 1], [], []>} : vector<8x12xbf16>, vector<12x128xbf16>, vector<8x128xf32> -> vector<8x128xf32>
    %c0_112 = arith.constant 0 : index
    %c9 = arith.constant 9 : index
    %c0_113 = arith.constant 0 : index
    %c0_114 = arith.constant 0 : index
    %103 = vector.load %arg2[%c0_112, %c9, %c0_113, %c0_114] : memref<1x17x8x12xbf16, #tpu.memory_space<vmem>>, vector<1x1x8x12xbf16>
    %104 = vector.shape_cast %103 : vector<1x1x8x12xbf16> to vector<8x12xbf16>
    %c1_115 = arith.constant 1 : index
    %c0_116 = arith.constant 0 : index
    %c0_117 = arith.constant 0 : index
    %105 = vector.load %arg3[%c1_115, %c0_116, %c0_117] : memref<3x12x128xbf16, #tpu.memory_space<vmem>>, vector<1x12x128xbf16>
    %106 = vector.shape_cast %105 : vector<1x12x128xbf16> to vector<12x128xbf16>
    %cst_118 = arith.constant dense<0.000000e+00> : vector<8x128xf32>
    %107 = tpu.matmul %104, %106, %cst_118 {dimension_numbers = #tpu.dot_dimension_numbers<[1], [0], [0], [1], [0, 0, 1, 1], [], []>} : vector<8x12xbf16>, vector<12x128xbf16>, vector<8x128xf32> -> vector<8x128xf32>
    %108 = arith.addf %102, %107 : vector<8x128xf32>
    %c0_119 = arith.constant 0 : index
    %c10 = arith.constant 10 : index
    %c0_120 = arith.constant 0 : index
    %c0_121 = arith.constant 0 : index
    %109 = vector.load %arg2[%c0_119, %c10, %c0_120, %c0_121] : memref<1x17x8x12xbf16, #tpu.memory_space<vmem>>, vector<1x1x8x12xbf16>
    %110 = vector.shape_cast %109 : vector<1x1x8x12xbf16> to vector<8x12xbf16>
    %c2_122 = arith.constant 2 : index
    %c0_123 = arith.constant 0 : index
    %c0_124 = arith.constant 0 : index
    %111 = vector.load %arg3[%c2_122, %c0_123, %c0_124] : memref<3x12x128xbf16, #tpu.memory_space<vmem>>, vector<1x12x128xbf16>
    %112 = vector.shape_cast %111 : vector<1x12x128xbf16> to vector<12x128xbf16>
    %cst_125 = arith.constant dense<0.000000e+00> : vector<8x128xf32>
    %113 = tpu.matmul %110, %112, %cst_125 {dimension_numbers = #tpu.dot_dimension_numbers<[1], [0], [0], [1], [0, 0, 1, 1], [], []>} : vector<8x12xbf16>, vector<12x128xbf16>, vector<8x128xf32> -> vector<8x128xf32>
    %114 = arith.addf %108, %113 : vector<8x128xf32>
    %115 = arith.truncf %114 : vector<8x128xf32> to vector<8x128xbf16>
    %c0_126 = arith.constant 0 : index
    %c4_127 = arith.constant 4 : index
    %c0_128 = arith.constant 0 : index
    %c0_129 = arith.constant 0 : index
    %116 = vector.load %arg4[%c0_126, %c4_127, %c0_128, %c0_129] : memref<1x8x8x128xbf16, #tpu.memory_space<vmem>>, vector<1x1x8x128xbf16>
    %117 = vector.shape_cast %116 : vector<1x1x8x128xbf16> to vector<8x128xbf16>
    %118 = vector.shape_cast %115 : vector<8x128xbf16> to vector<1x1x8x128xbf16>
    tpu.vector_store %arg4[%c0_126, %c4_127, %c0_128, %c0_129], %118 {strides = array<i32>} : memref<1x8x8x128xbf16, #tpu.memory_space<vmem>>, vector<1x1x8x128xbf16>,
    %119 = arith.addf %95, %114 : vector<8x128xf32>
    %120 = arith.mulf %114, %114 : vector<8x128xf32>
    %121 = arith.addf %97, %120 : vector<8x128xf32>
    %c0_130 = arith.constant 0 : index
    %c10_131 = arith.constant 10 : index
    %c0_132 = arith.constant 0 : index
    %c0_133 = arith.constant 0 : index
    %122 = vector.load %arg2[%c0_130, %c10_131, %c0_132, %c0_133] : memref<1x17x8x12xbf16, #tpu.memory_space<vmem>>, vector<1x1x8x12xbf16>
    %123 = vector.shape_cast %122 : vector<1x1x8x12xbf16> to vector<8x12xbf16>
    %c0_134 = arith.constant 0 : index
    %c0_135 = arith.constant 0 : index
    %c0_136 = arith.constant 0 : index
    %124 = vector.load %arg3[%c0_134, %c0_135, %c0_136] : memref<3x12x128xbf16, #tpu.memory_space<vmem>>, vector<1x12x128xbf16>
    %125 = vector.shape_cast %124 : vector<1x12x128xbf16> to vector<12x128xbf16>
    %cst_137 = arith.constant dense<0.000000e+00> : vector<8x128xf32>
    %126 = tpu.matmul %123, %125, %cst_137 {dimension_numbers = #tpu.dot_dimension_numbers<[1], [0], [0], [1], [0, 0, 1, 1], [], []>} : vector<8x12xbf16>, vector<12x128xbf16>, vector<8x128xf32> -> vector<8x128xf32>
    %c0_138 = arith.constant 0 : index
    %c11 = arith.constant 11 : index
    %c0_139 = arith.constant 0 : index
    %c0_140 = arith.constant 0 : index
    %127 = vector.load %arg2[%c0_138, %c11, %c0_139, %c0_140] : memref<1x17x8x12xbf16, #tpu.memory_space<vmem>>, vector<1x1x8x12xbf16>
    %128 = vector.shape_cast %127 : vector<1x1x8x12xbf16> to vector<8x12xbf16>
    %c1_141 = arith.constant 1 : index
    %c0_142 = arith.constant 0 : index
    %c0_143 = arith.constant 0 : index
    %129 = vector.load %arg3[%c1_141, %c0_142, %c0_143] : memref<3x12x128xbf16, #tpu.memory_space<vmem>>, vector<1x12x128xbf16>
    %130 = vector.shape_cast %129 : vector<1x12x128xbf16> to vector<12x128xbf16>
    %cst_144 = arith.constant dense<0.000000e+00> : vector<8x128xf32>
    %131 = tpu.matmul %128, %130, %cst_144 {dimension_numbers = #tpu.dot_dimension_numbers<[1], [0], [0], [1], [0, 0, 1, 1], [], []>} : vector<8x12xbf16>, vector<12x128xbf16>, vector<8x128xf32> -> vector<8x128xf32>
    %132 = arith.addf %126, %131 : vector<8x128xf32>
    %c0_145 = arith.constant 0 : index
    %c12 = arith.constant 12 : index
    %c0_146 = arith.constant 0 : index
    %c0_147 = arith.constant 0 : index
    %133 = vector.load %arg2[%c0_145, %c12, %c0_146, %c0_147] : memref<1x17x8x12xbf16, #tpu.memory_space<vmem>>, vector<1x1x8x12xbf16>
    %134 = vector.shape_cast %133 : vector<1x1x8x12xbf16> to vector<8x12xbf16>
    %c2_148 = arith.constant 2 : index
    %c0_149 = arith.constant 0 : index
    %c0_150 = arith.constant 0 : index
    %135 = vector.load %arg3[%c2_148, %c0_149, %c0_150] : memref<3x12x128xbf16, #tpu.memory_space<vmem>>, vector<1x12x128xbf16>
    %136 = vector.shape_cast %135 : vector<1x12x128xbf16> to vector<12x128xbf16>
    %cst_151 = arith.constant dense<0.000000e+00> : vector<8x128xf32>
    %137 = tpu.matmul %134, %136, %cst_151 {dimension_numbers = #tpu.dot_dimension_numbers<[1], [0], [0], [1], [0, 0, 1, 1], [], []>} : vector<8x12xbf16>, vector<12x128xbf16>, vector<8x128xf32> -> vector<8x128xf32>
    %138 = arith.addf %132, %137 : vector<8x128xf32>
    %139 = arith.truncf %138 : vector<8x128xf32> to vector<8x128xbf16>
    %c0_152 = arith.constant 0 : index
    %c5_153 = arith.constant 5 : index
    %c0_154 = arith.constant 0 : index
    %c0_155 = arith.constant 0 : index
    %140 = vector.load %arg4[%c0_152, %c5_153, %c0_154, %c0_155] : memref<1x8x8x128xbf16, #tpu.memory_space<vmem>>, vector<1x1x8x128xbf16>
    %141 = vector.shape_cast %140 : vector<1x1x8x128xbf16> to vector<8x128xbf16>
    %142 = vector.shape_cast %139 : vector<8x128xbf16> to vector<1x1x8x128xbf16>
    tpu.vector_store %arg4[%c0_152, %c5_153, %c0_154, %c0_155], %142 {strides = array<i32>} : memref<1x8x8x128xbf16, #tpu.memory_space<vmem>>, vector<1x1x8x128xbf16>,
    %143 = arith.addf %119, %138 : vector<8x128xf32>
    %144 = arith.mulf %138, %138 : vector<8x128xf32>
    %145 = arith.addf %121, %144 : vector<8x128xf32>
    %c0_156 = arith.constant 0 : index
    %c12_157 = arith.constant 12 : index
    %c0_158 = arith.constant 0 : index
    %c0_159 = arith.constant 0 : index
    %146 = vector.load %arg2[%c0_156, %c12_157, %c0_158, %c0_159] : memref<1x17x8x12xbf16, #tpu.memory_space<vmem>>, vector<1x1x8x12xbf16>
    %147 = vector.shape_cast %146 : vector<1x1x8x12xbf16> to vector<8x12xbf16>
    %c0_160 = arith.constant 0 : index
    %c0_161 = arith.constant 0 : index
    %c0_162 = arith.constant 0 : index
    %148 = vector.load %arg3[%c0_160, %c0_161, %c0_162] : memref<3x12x128xbf16, #tpu.memory_space<vmem>>, vector<1x12x128xbf16>
    %149 = vector.shape_cast %148 : vector<1x12x128xbf16> to vector<12x128xbf16>
    %cst_163 = arith.constant dense<0.000000e+00> : vector<8x128xf32>
    %150 = tpu.matmul %147, %149, %cst_163 {dimension_numbers = #tpu.dot_dimension_numbers<[1], [0], [0], [1], [0, 0, 1, 1], [], []>} : vector<8x12xbf16>, vector<12x128xbf16>, vector<8x128xf32> -> vector<8x128xf32>
    %c0_164 = arith.constant 0 : index
    %c13 = arith.constant 13 : index
    %c0_165 = arith.constant 0 : index
    %c0_166 = arith.constant 0 : index
    %151 = vector.load %arg2[%c0_164, %c13, %c0_165, %c0_166] : memref<1x17x8x12xbf16, #tpu.memory_space<vmem>>, vector<1x1x8x12xbf16>
    %152 = vector.shape_cast %151 : vector<1x1x8x12xbf16> to vector<8x12xbf16>
    %c1_167 = arith.constant 1 : index
    %c0_168 = arith.constant 0 : index
    %c0_169 = arith.constant 0 : index
    %153 = vector.load %arg3[%c1_167, %c0_168, %c0_169] : memref<3x12x128xbf16, #tpu.memory_space<vmem>>, vector<1x12x128xbf16>
    %154 = vector.shape_cast %153 : vector<1x12x128xbf16> to vector<12x128xbf16>
    %cst_170 = arith.constant dense<0.000000e+00> : vector<8x128xf32>
    %155 = tpu.matmul %152, %154, %cst_170 {dimension_numbers = #tpu.dot_dimension_numbers<[1], [0], [0], [1], [0, 0, 1, 1], [], []>} : vector<8x12xbf16>, vector<12x128xbf16>, vector<8x128xf32> -> vector<8x128xf32>
    %156 = arith.addf %150, %155 : vector<8x128xf32>
    %c0_171 = arith.constant 0 : index
    %c14 = arith.constant 14 : index
    %c0_172 = arith.constant 0 : index
    %c0_173 = arith.constant 0 : index
    %157 = vector.load %arg2[%c0_171, %c14, %c0_172, %c0_173] : memref<1x17x8x12xbf16, #tpu.memory_space<vmem>>, vector<1x1x8x12xbf16>
    %158 = vector.shape_cast %157 : vector<1x1x8x12xbf16> to vector<8x12xbf16>
    %c2_174 = arith.constant 2 : index
    %c0_175 = arith.constant 0 : index
    %c0_176 = arith.constant 0 : index
    %159 = vector.load %arg3[%c2_174, %c0_175, %c0_176] : memref<3x12x128xbf16, #tpu.memory_space<vmem>>, vector<1x12x128xbf16>
    %160 = vector.shape_cast %159 : vector<1x12x128xbf16> to vector<12x128xbf16>
    %cst_177 = arith.constant dense<0.000000e+00> : vector<8x128xf32>
    %161 = tpu.matmul %158, %160, %cst_177 {dimension_numbers = #tpu.dot_dimension_numbers<[1], [0], [0], [1], [0, 0, 1, 1], [], []>} : vector<8x12xbf16>, vector<12x128xbf16>, vector<8x128xf32> -> vector<8x128xf32>
    %162 = arith.addf %156, %161 : vector<8x128xf32>
    %163 = arith.truncf %162 : vector<8x128xf32> to vector<8x128xbf16>
    %c0_178 = arith.constant 0 : index
    %c6_179 = arith.constant 6 : index
    %c0_180 = arith.constant 0 : index
    %c0_181 = arith.constant 0 : index
    %164 = vector.load %arg4[%c0_178, %c6_179, %c0_180, %c0_181] : memref<1x8x8x128xbf16, #tpu.memory_space<vmem>>, vector<1x1x8x128xbf16>
    %165 = vector.shape_cast %164 : vector<1x1x8x128xbf16> to vector<8x128xbf16>
    %166 = vector.shape_cast %163 : vector<8x128xbf16> to vector<1x1x8x128xbf16>
    tpu.vector_store %arg4[%c0_178, %c6_179, %c0_180, %c0_181], %166 {strides = array<i32>} : memref<1x8x8x128xbf16, #tpu.memory_space<vmem>>, vector<1x1x8x128xbf16>,
    %167 = arith.addf %143, %162 : vector<8x128xf32>
    %168 = arith.mulf %162, %162 : vector<8x128xf32>
    %169 = arith.addf %145, %168 : vector<8x128xf32>
    %c0_182 = arith.constant 0 : index
    %c14_183 = arith.constant 14 : index
    %c0_184 = arith.constant 0 : index
    %c0_185 = arith.constant 0 : index
    %170 = vector.load %arg2[%c0_182, %c14_183, %c0_184, %c0_185] : memref<1x17x8x12xbf16, #tpu.memory_space<vmem>>, vector<1x1x8x12xbf16>
    %171 = vector.shape_cast %170 : vector<1x1x8x12xbf16> to vector<8x12xbf16>
    %c0_186 = arith.constant 0 : index
    %c0_187 = arith.constant 0 : index
    %c0_188 = arith.constant 0 : index
    %172 = vector.load %arg3[%c0_186, %c0_187, %c0_188] : memref<3x12x128xbf16, #tpu.memory_space<vmem>>, vector<1x12x128xbf16>
    %173 = vector.shape_cast %172 : vector<1x12x128xbf16> to vector<12x128xbf16>
    %cst_189 = arith.constant dense<0.000000e+00> : vector<8x128xf32>
    %174 = tpu.matmul %171, %173, %cst_189 {dimension_numbers = #tpu.dot_dimension_numbers<[1], [0], [0], [1], [0, 0, 1, 1], [], []>} : vector<8x12xbf16>, vector<12x128xbf16>, vector<8x128xf32> -> vector<8x128xf32>
    %c0_190 = arith.constant 0 : index
    %c15 = arith.constant 15 : index
    %c0_191 = arith.constant 0 : index
    %c0_192 = arith.constant 0 : index
    %175 = vector.load %arg2[%c0_190, %c15, %c0_191, %c0_192] : memref<1x17x8x12xbf16, #tpu.memory_space<vmem>>, vector<1x1x8x12xbf16>
    %176 = vector.shape_cast %175 : vector<1x1x8x12xbf16> to vector<8x12xbf16>
    %c1_193 = arith.constant 1 : index
    %c0_194 = arith.constant 0 : index
    %c0_195 = arith.constant 0 : index
    %177 = vector.load %arg3[%c1_193, %c0_194, %c0_195] : memref<3x12x128xbf16, #tpu.memory_space<vmem>>, vector<1x12x128xbf16>
    %178 = vector.shape_cast %177 : vector<1x12x128xbf16> to vector<12x128xbf16>
    %cst_196 = arith.constant dense<0.000000e+00> : vector<8x128xf32>
    %179 = tpu.matmul %176, %178, %cst_196 {dimension_numbers = #tpu.dot_dimension_numbers<[1], [0], [0], [1], [0, 0, 1, 1], [], []>} : vector<8x12xbf16>, vector<12x128xbf16>, vector<8x128xf32> -> vector<8x128xf32>
    %180 = arith.addf %174, %179 : vector<8x128xf32>
    %c0_197 = arith.constant 0 : index
    %c16 = arith.constant 16 : index
    %c0_198 = arith.constant 0 : index
    %c0_199 = arith.constant 0 : index
    %181 = vector.load %arg2[%c0_197, %c16, %c0_198, %c0_199] : memref<1x17x8x12xbf16, #tpu.memory_space<vmem>>, vector<1x1x8x12xbf16>
    %182 = vector.shape_cast %181 : vector<1x1x8x12xbf16> to vector<8x12xbf16>
    %c2_200 = arith.constant 2 : index
    %c0_201 = arith.constant 0 : index
    %c0_202 = arith.constant 0 : index
    %183 = vector.load %arg3[%c2_200, %c0_201, %c0_202] : memref<3x12x128xbf16, #tpu.memory_space<vmem>>, vector<1x12x128xbf16>
    %184 = vector.shape_cast %183 : vector<1x12x128xbf16> to vector<12x128xbf16>
    %cst_203 = arith.constant dense<0.000000e+00> : vector<8x128xf32>
    %185 = tpu.matmul %182, %184, %cst_203 {dimension_numbers = #tpu.dot_dimension_numbers<[1], [0], [0], [1], [0, 0, 1, 1], [], []>} : vector<8x12xbf16>, vector<12x128xbf16>, vector<8x128xf32> -> vector<8x128xf32>
    %186 = arith.addf %180, %185 : vector<8x128xf32>
    %187 = arith.truncf %186 : vector<8x128xf32> to vector<8x128xbf16>
    %c0_204 = arith.constant 0 : index
    %c7_205 = arith.constant 7 : index
    %c0_206 = arith.constant 0 : index
    %c0_207 = arith.constant 0 : index
    %188 = vector.load %arg4[%c0_204, %c7_205, %c0_206, %c0_207] : memref<1x8x8x128xbf16, #tpu.memory_space<vmem>>, vector<1x1x8x128xbf16>
    %189 = vector.shape_cast %188 : vector<1x1x8x128xbf16> to vector<8x128xbf16>
    %190 = vector.shape_cast %187 : vector<8x128xbf16> to vector<1x1x8x128xbf16>
    tpu.vector_store %arg4[%c0_204, %c7_205, %c0_206, %c0_207], %190 {strides = array<i32>} : memref<1x8x8x128xbf16, #tpu.memory_space<vmem>>, vector<1x1x8x128xbf16>,
    %191 = arith.addf %167, %186 : vector<8x128xf32>
    %192 = arith.mulf %186, %186 : vector<8x128xf32>
    %193 = arith.addf %169, %192 : vector<8x128xf32>
    %cst_208 = arith.constant 1.000000e+00 : f32
    %194 = vector.broadcast %cst_208 : f32 to vector<1x8xf32>
    %cst_209 = arith.constant dense<0.000000e+00> : vector<1x128xf32>
    %195 = tpu.matmul %194, %191, %cst_209 {dimension_numbers = #tpu.dot_dimension_numbers<[1], [0], [0], [1], [0, 0, 1, 1], [], []>} : vector<1x8xf32>, vector<8x128xf32>, vector<1x128xf32> -> vector<1x128xf32>
    %c0_210 = arith.constant 0 : index
    %c0_211 = arith.constant 0 : index
    %c0_212 = arith.constant 0 : index
    %196 = vector.load %arg5[%c0_210, %c0_211, %c0_212] : memref<1x1x128xf32, #tpu.memory_space<vmem>>, vector<1x1x128xf32>
    %197 = vector.shape_cast %196 : vector<1x1x128xf32> to vector<1x128xf32>
    %198 = vector.shape_cast %195 : vector<1x128xf32> to vector<1x1x128xf32>
    tpu.vector_store %arg5[%c0_210, %c0_211, %c0_212], %198 {strides = array<i32>} : memref<1x1x128xf32, #tpu.memory_space<vmem>>, vector<1x1x128xf32>,
    %cst_213 = arith.constant dense<0.000000e+00> : vector<1x128xf32>
    %199 = tpu.matmul %194, %193, %cst_213 {dimension_numbers = #tpu.dot_dimension_numbers<[1], [0], [0], [1], [0, 0, 1, 1], [], []>} : vector<1x8xf32>, vector<8x128xf32>, vector<1x128xf32> -> vector<1x128xf32>
    %c0_214 = arith.constant 0 : index
    %c0_215 = arith.constant 0 : index
    %c0_216 = arith.constant 0 : index
    %200 = vector.load %arg6[%c0_214, %c0_215, %c0_216] : memref<1x1x128xf32, #tpu.memory_space<vmem>>, vector<1x1x128xf32>
    %201 = vector.shape_cast %200 : vector<1x1x128xf32> to vector<1x128xf32>
    %202 = vector.shape_cast %199 : vector<1x128xf32> to vector<1x1x128xf32>
    tpu.vector_store %arg6[%c0_214, %c0_215, %c0_216], %202 {strides = array<i32>} : memref<1x1x128xf32, #tpu.memory_space<vmem>>, vector<1x1x128xf32>,
    return
  }
  func.func @transform_0(%arg0: i32, %arg1: i32) -> (i32, i32, i32, i32) {
    %c1_i32 = arith.constant 1 : i32
    %0 = arith.muli %arg0, %c1_i32 : i32
    %1 = arith.addi %0, %arg1 : i32
    %c0_i32 = arith.constant 0 : i32
    %c0_i32_0 = arith.constant 0 : i32
    %c0_i32_1 = arith.constant 0 : i32
    %c0_i32_2 = arith.constant 0 : i32
    return %1, %c0_i32, %c0_i32_0, %c0_i32_1 : i32, i32, i32, i32
  }
  func.func @transform_1(%arg0: i32, %arg1: i32) -> (i32, i32, i32) {
    %c0_i32 = arith.constant 0 : i32
    %c0_i32_0 = arith.constant 0 : i32
    %c0_i32_1 = arith.constant 0 : i32
    %c0_i32_2 = arith.constant 0 : i32
    return %c0_i32, %c0_i32_0, %c0_i32_1 : i32, i32, i32
  }
  func.func @transform_2(%arg0: i32, %arg1: i32) -> (i32, i32, i32, i32) {
    %c0_i32 = arith.constant 0 : i32
    %c0_i32_0 = arith.constant 0 : i32
    %c0_i32_1 = arith.constant 0 : i32
    return %arg0, %arg1, %c0_i32, %c0_i32_0 : i32, i32, i32, i32
  }
  func.func @transform_3(%arg0: i32, %arg1: i32) -> (i32, i32, i32) {
    %c1_i32 = arith.constant 1 : i32
    %0 = arith.muli %arg0, %c1_i32 : i32
    %1 = arith.addi %0, %arg1 : i32
    %c0_i32 = arith.constant 0 : i32
    %c0_i32_0 = arith.constant 0 : i32
    %c0_i32_1 = arith.constant 0 : i32
    return %1, %c0_i32, %c0_i32_0 : i32, i32, i32
  }
  func.func @transform_4(%arg0: i32, %arg1: i32) -> (i32, i32, i32) {
    %c1_i32 = arith.constant 1 : i32
    %0 = arith.muli %arg0, %c1_i32 : i32
    %1 = arith.addi %0, %arg1 : i32
    %c0_i32 = arith.constant 0 : i32
    %c0_i32_0 = arith.constant 0 : i32
    %c0_i32_1 = arith.constant 0 : i32
    return %1, %c0_i32, %c0_i32_0 : i32, i32, i32
  }
}

</mosaic_0001>

<bundles_post_ra>
// kernel: tpu_custom_call.1
= control target key start
LH: loop header
LB: loop body
LE: loop exit
PB: predicated region body
PF: predicated region fallthrough
CT: control target
= control target key end

     0   :  { %10 = vsyncpa [#allocation3], 0  ;;  %s2989_s0 = inlined_call_operand.vmem [shape: bf16[2,17,8,12], index: 0, kind: input, shape index: {}]   ;;  %s2990_s1 = inlined_call_operand.vmem [shape: bf16[3,12,128], index: 1, kind: input, shape index: {}]   ;;  %s2991_s2 = inlined_call_operand.hbm [shape: bf16[2,8,8,128], index: 2, kind: output, shape index: {0}]   ;;  %s2992_s3 = inlined_call_operand.hbm [shape: f32[2,1,128], index: 3, kind: output, shape index: {1}]   ;;  %s2993_s4 = inlined_call_operand.hbm [shape: f32[2,1,128], index: 4, kind: output, shape index: {2}]  }
   0x1   :  { %12 = vsyncpa [#allocation3 + $0x1], 0 }
   0x2   :  { %13 = vsyncpa [#allocation5], 0 }
   0x3   :  { %15 = vsyncpa [#allocation5 + $0x1], 0  ;;  %s2533_s15 = smov 0   ;;  %s2535_s16 = smov 0  }
   0x4   :  { %s2537_s17 = smov 0   ;;  %s2539_s18 = smov 0  }
   0x5   :  { %s2541_s19 = smov 0   ;;  %s2543_s20 = smov 0  }
   0x6 LB: > { %s1938_s21 = sadd.s32 4294967295, %s2498_s20   ;;  %s2994_s22 = sadd.s32 4294967294, %s2498_s20   ;;  %s2498_s20 = sphi %s2543_s20, %s21_s20   ;;  %s2494_s19 = sphi %s2541_s19, %s3002_s19   ;;  %s2490_s18 = sphi %s2539_s18, %s3001_s18   ;;  %s2486_s17 = sphi %s2537_s17, %s3000_s17   ;;  %s2482_s16 = sphi %s2535_s16, %s2999_s16   ;;  %s2478_s15 = sphi %s2533_s15, %s2998_s15  }
   0x7   : > { %s33_s23 = sadd.s32 1, %s2494_s19  ;;  %s91_s24 = sadd.s32 1, %s2486_s17 }
   0x8   : > { %p35_p0 = scmp.ge.s32.totalorder %s33_s23, 2  ;;  %p101_p1 = scmp.ne.s32.totalorder %s2486_s17, %s2482_s16 }
   0x9   : > { %p102_p2 = scmp.eq.s32.totalorder %s1938_s21, 1  ;;  %p107_p3 = scmp.ne.s32.totalorder %s2482_s16, %s2478_s15 }
   0xa   : > { %s3004_s23 = smov (%p35_p0, %s33_s23), 0  ;;  %p108_p5 = scmp.eq.s32.totalorder %s2994_s22, 1 }
   0xb   : > { %p2575_p4 = por %p102_p2, %p101_p1  ;;  %s86_s26 = ssub.s32 %s2494_s19, %s3004_s23 }
   0xc   : > { %p1942_p6 = scmp.ge.s32.totalorder %s2498_s20, 1  ;;  %p89_p7 = scmp.eq.s32.totalorder %s86_s26, 0 }
   0xd   : > { %p2584_p8 = por %p108_p5, %p107_p3  ;;  %p195_p9 = scmp.lt.s32.totalorder %s2498_s20, 3 }
   0xe   : > { %s2590_s28 = scalar_select %p89_p7, %s2486_s17, %s91_s24  }
   0xf   : > { %p196_p10 = pnand %p1942_p6, %p195_p9 }
  0x10   : > { %p231_p11 = scmp.lt.s32.totalorder (!%p196_p10), %s2490_s18, 1  ;;  %s2822_s29 = sand.u32 (!%p196_p10), 1, %s2482_s16  }
  0x11   : > { %199 = sbr.rel (%p196_p10) target bundleno = 545 (0x221), region = 28  ;;  %s2064_s6 = sshll.u32 (!%p196_p10), %s2490_s18, 9 }
  0x12   : > { %s2870_s9 = scalar_lea.hbm (!%p196_p10), %s2991_s2, %s2064_s6  ;;  %s1759_s10 = scalar_lea.sflag (!%p196_p10), [#allocation3], %s2822_s29 }
  0x16   : > { %vm258_vm0 = vcmask 1045504   ;;  %v2500_v0 = vmov 0.0   ;;  %v2342_v1 = vld [vmem:[%s2990_s1 + $0x8] sm:$0x3f]   ;;  %v2343_v2 = vld [vmem:[%s2990_s1] sm:$0x3f]  }
  0x17   : > { %2117 = vmatprep.subr.bf16.mxu0 %v2500_v0  ;;  %2123 = vmatprep.subr.bf16.mxu1 %v2500_v0  ;;  %v260_v3 = vsel %vm258_vm0, %v2342_v1, 0  ;;  %vm2501_vm1 = vmmov 0   ;;  %v311_v4 = vsel %vm258_vm0, %v2343_v2, 0  ;;  %s232_s7 = scalar_select %p231_p11, %s2490_s18, 1  ;;  %v2344_v5 = vld [vmem:[%s2990_s1 + $0x10] sm:$0x3f]  }
  0x18   : > { %2119 = vmatprep.mubr.msk.bf16.mxu0 %vm2501_vm1, %v2500_v0  ;;  %2125 = vmatprep.mubr.msk.bf16.mxu1 %vm2501_vm1, %v2500_v0  ;;  %v2345_v6 = vld [vmem:[%s2990_s1 + $0x8] sm:$0x3f]   ;;  %vm254_vm2 = vcmask 97280   ;;  %v367_v7 = vsel %vm258_vm0, %v2344_v5, 0  ;;  %v2346_v11 = vld [vmem:[%s2990_s1] sm:$0x3f]  }
  0x19   : > { %2118 = vmatpush3.bf16.msra.mxu0 %v260_v3  ;;  %2124 = vmatpush3.bf16.msra.mxu1 %v311_v4  ;;  %s2271_s12 = smul.u32 68, %s232_s7  ;;  %v431_v8 = vsel %vm258_vm0, %v2345_v6, 0  ;;  %v2347_v12 = vld [vmem:[%s2990_s1 + $0x10] sm:$0x3f]   ;;  %v482_v15 = vsel %vm258_vm0, %v2346_v11, 0  ;;  %vm1612_vm3 = vcmask 64512  }
  0x1a   : > { %2129 = vmatprep.subr.bf16.mxu0 %v2500_v0  ;;  %2135 = vmatprep.subr.bf16.mxu1 %v2500_v0  ;;  %v537_v16 = vsel %vm258_vm0, %v2347_v12, 0  ;;  %v2348_v17 = vld [vmem:[%s2990_s1 + $0x8] sm:$0x3f]   ;;  %v2349_v18 = vld [vmem:[%s2990_s1] sm:$0x3f]  }
  0x1b   : > { %s2619_s24 = scalar_lea.vmem %s2989_s0, %s2271_s12  ;;  %v602_v21 = vsel %vm258_vm0, %v2348_v17, 0  ;;  %v653_v22 = vsel %vm258_vm0, %v2349_v18, 0  ;;  %v2350_v23 = vld [vmem:[%s2990_s1 + $0x10] sm:$0x3f]   ;;  %v2351_v24 = vld [vmem:[%s2990_s1 + $0x8] sm:$0x3f]  }
  0x1c   : > { %v1945_v9 = vld [vmem:[%s2619_s24 + $0x4] sm:$0xf]  ;;  %v241_v10 = vld [vmem:[%s2619_s24] sm:$0xf]  ;;  %v1952_v13 = vld [vmem:[%s2619_s24 + $0x8] sm:$0xf] }
  0x1d   : > { %2120 = vmatmul.mubr.msk.bf16.vlgmr.msra.gmra.mxu0 %vm254_vm2, %v1945_v9  ;;  %2126 = vmatmul.mubr.msk.bf16.vlgmr.msra.gmra.mxu1 %vm254_vm2, %v241_v10  ;;  %v1958_v14 = vld [vmem:[%s2619_s24 + $0xc] sm:$0xf]  ;;  %v1957_v19 = vld [vmem:[%s2619_s24 + $0x8] sm:$0xf]  ;;  %v1965_v20 = vld [vmem:[%s2619_s24 + $0x10] sm:$0xf] }
  0x1e   : > { %2130 = vmatpush3.bf16.msra.mxu0 %v367_v7  ;;  %2136 = vmatpush3.bf16.msra.mxu1 %v431_v8  ;;  %v1972_v25 = vld [vmem:[%s2619_s24 + $0x14] sm:$0xf]  ;;  %v1971_v26 = vld [vmem:[%s2619_s24 + $0x10] sm:$0xf]  ;;  %v708_v27 = vsel %vm258_vm0, %v2350_v23, 0  ;;  %v773_v28 = vsel %vm258_vm0, %v2351_v24, 0 }
  0x1f   : > { %2131 = vmatprep.mubr.msk.bf16.mxu0 %vm2501_vm1, %v2500_v0  ;;  %2137 = vmatprep.mubr.msk.bf16.mxu1 %vm2501_vm1, %v2500_v0  ;;  %v2352_v29 = vld [vmem:[%s2990_s1] sm:$0x3f]   ;;  %v2353_v30 = vld [vmem:[%s2990_s1 + $0x10] sm:$0x3f]   ;;  %v1979_v31 = vld [vmem:[%s2619_s24 + $0x18] sm:$0xf] }
  0x20   : > { %2141 = vmatprep.subr.bf16.mxu0 %v2500_v0  ;;  %2147 = vmatprep.subr.bf16.mxu1 %v2500_v0  ;;  %v1986_v32 = vld [vmem:[%s2619_s24 + $0x1c] sm:$0xf]  ;;  %v824_v33 = vsel %vm258_vm0, %v2352_v29, 0  ;;  %v879_v34 = vsel %vm258_vm0, %v2353_v30, 0  ;;  %v2354_v35 = vld [vmem:[%s2990_s1 + $0x8] sm:$0x3f]  }
  0x21   : > { %v2355_v36 = vld [vmem:[%s2990_s1] sm:$0x3f]   ;;  %v1985_v37 = vld [vmem:[%s2619_s24 + $0x18] sm:$0xf]  ;;  %v944_v39 = vsel %vm258_vm0, %v2354_v35, 0  ;;  %s2503_s12 = smov [#allocation2]  }
  0x22   : > { %v1993_v38 = vld [vmem:[%s2619_s24 + $0x20] sm:$0xf]  ;;  %v995_v40 = vsel %vm258_vm0, %v2355_v36, 0  ;;  %v2356_v41 = vld [vmem:[%s2990_s1 + $0x10] sm:$0x3f]   ;;  %s2370_s13 = sshll.u32 %s2503_s12, 4  ;;  %s2371_s13 = int_to_ptr.vmem [resolvable:$false] %s2370_s13 }
  0x23   : > { %v2357_v42 = vld [vmem:[%s2990_s1 + $0x8] sm:$0x3f]   ;;  %v2000_v43 = vld [vmem:[%s2619_s24 + $0x24] sm:$0xf]  ;;  %v1999_v44 = vld [vmem:[%s2619_s24 + $0x20] sm:$0xf] }
  0x24   : > { %v1050_v45 = vsel %vm258_vm0, %v2356_v41, 0  ;;  %v1115_v46 = vsel %vm258_vm0, %v2357_v42, 0  ;;  %v2358_v47 = vld [vmem:[%s2990_s1] sm:$0x3f]   ;;  %v2359_v48 = vld [vmem:[%s2990_s1 + $0x10] sm:$0x3f]  }
  0x25   : > { %2132 = vmatmul.mubr.msk.bf16.vlgmr.msra.gmra.mxu0 %vm254_vm2, %v1952_v13  ;;  %2138 = vmatmul.mubr.msk.bf16.vlgmr.msra.gmra.mxu1 %vm254_vm2, %v1958_v14  ;;  %v2007_v49 = vld [vmem:[%s2619_s24 + $0x28] sm:$0xf]  ;;  %v2014_v50 = vld [vmem:[%s2619_s24 + $0x2c] sm:$0xf]  ;;  %v1166_v51 = vsel %vm258_vm0, %v2358_v47, 0  ;;  %v1221_v52 = vsel %vm258_vm0, %v2359_v48, 0 }
  0x26   : > { %2142 = vmatpush3.bf16.msra.mxu0 %v482_v15  ;;  %2148 = vmatpush3.bf16.msra.mxu1 %v537_v16  ;;  %v2360_v53 = vld [vmem:[%s2990_s1 + $0x8] sm:$0x3f]   ;;  %v2361_v54 = vld [vmem:[%s2990_s1] sm:$0x3f]   ;;  %v2021_v56 = vld [vmem:[%s2619_s24 + $0x30] sm:$0xf] }
  0x27   : > { %2143 = vmatprep.mubr.msk.bf16.mxu0 %vm2501_vm1, %v2500_v0  ;;  %2149 = vmatprep.mubr.msk.bf16.mxu1 %vm2501_vm1, %v2500_v0  ;;  %v2013_v55 = vld [vmem:[%s2619_s24 + $0x28] sm:$0xf]  ;;  %v1286_v57 = vsel %vm258_vm0, %v2360_v53, 0  ;;  %v1337_v58 = vsel %vm258_vm0, %v2361_v54, 0  ;;  %v2362_v59 = vld [vmem:[%s2990_s1 + $0x10] sm:$0x3f]  }
  0x28   : > { %2153 = vmatprep.subr.bf16.mxu0 %v2500_v0  ;;  %2159 = vmatprep.subr.bf16.mxu1 %v2500_v0  ;;  %v2363_v60 = vld [vmem:[%s2990_s1 + $0x8] sm:$0x3f]   ;;  %v2028_v61 = vld [vmem:[%s2619_s24 + $0x34] sm:$0xf]  ;;  %v2027_v62 = vld [vmem:[%s2619_s24 + $0x30] sm:$0xf] }
  0x29   : > { %v1392_v63 = vsel %vm258_vm0, %v2362_v59, 0  ;;  %v1457_v1 = vsel %vm258_vm0, %v2363_v60, 0  ;;  %v2364_v2 = vld [vmem:[%s2990_s1] sm:$0x3f]   ;;  %v2365_v3 = vld [vmem:[%s2990_s1 + $0x10] sm:$0x3f]  }
  0x2a   : > { %v2035_v4 = vld [vmem:[%s2619_s24 + $0x38] sm:$0xf]  ;;  %v2042_v5 = vld [vmem:[%s2619_s24 + $0x3c] sm:$0xf]  ;;  %v1508_v6 = vsel %vm258_vm0, %v2364_v2, 0  ;;  %v1563_v7 = vsel %vm258_vm0, %v2365_v3, 0 }
  0x2b   : > { %v2041_v8 = vld [vmem:[%s2619_s24 + $0x38] sm:$0xf]  ;;  %v2049_v9 = vld [vmem:[%s2619_s24 + $0x40] sm:$0xf]  ;;  %s1943_s24 = sshll.u32 %s2822_s29, 5  ;;  %s2372_s14 = scalar_lea.vmem %s2371_s13, 1024 }
  0x2c   : > { %s2829_s30 = scalar_lea.vmem [#allocation2], %s1943_s24 }
  0x2d   : > { %2144 = vmatmul.mubr.msk.bf16.vlgmr.msra.gmra.mxu0 %vm254_vm2, %v1957_v19  ;;  %2150 = vmatmul.mubr.msk.bf16.vlgmr.msra.gmra.mxu1 %vm254_vm2, %v1965_v20  ;;  %s1782_s5 = sshll.u32 %s2829_s30, 4  ;;  %s2865_s5 = int_to_ptr.vmem [resolvable:$true] %s1782_s5 }
  0x2e   : > { %2154 = vmatpush3.bf16.msra.mxu0 %v602_v21  ;;  %2160 = vmatpush3.bf16.msra.mxu1 %v653_v22  ;;  %s2366_s11 = scalar_lea.vmem %s2865_s5, 512  ;;  %p2373_p1 = scmp.lt.s32.totalorder %s2865_s5, %s2371_s13 }
  0x2f   : > { %2155 = vmatprep.mubr.msk.bf16.mxu0 %vm2501_vm1, %v2500_v0  ;;  %2161 = vmatprep.mubr.msk.bf16.mxu1 %vm2501_vm1, %v2500_v0  ;;  %p2367_p12 = scmp.ne.s32.totalorder %s2865_s5, %s2366_s11  ;;  %p2374_p2 = scmp.lt.s32.totalorder %s2372_s14, %s2366_s11 }
  0x30   : > { %2165 = vmatprep.subr.bf16.mxu0 %v2500_v0  ;;  %2171 = vmatprep.subr.bf16.mxu1 %v2500_v0 }
  0x31   : > { %p2368_p13 = pnand %p2367_p12, %p2575_p4  ;;  %p2375_p3 = por %p2374_p2, %p2373_p1 }
  0x33   : > { %p2369_p0 = pneg %p2368_p13 }
  0x35   : > { %2156 = vmatmul.mubr.msk.bf16.vlgmr.msra.gmra.mxu0 %vm254_vm2, %v1972_v25  ;;  %2162 = vmatmul.mubr.msk.bf16.vlgmr.msra.gmra.mxu1 %vm254_vm2, %v1971_v26  ;;  %p2376_p5 = pnand %p2375_p3, %p2369_p0 }
  0x36   : > { %2166 = vmatpush3.bf16.msra.mxu0 %v708_v27  ;;  %2172 = vmatpush3.bf16.msra.mxu1 %v773_v28 }
  0x37   : > { %2167 = vmatprep.mubr.msk.bf16.mxu0 %vm2501_vm1, %v2500_v0  ;;  %2173 = vmatprep.mubr.msk.bf16.mxu1 %vm2501_vm1, %v2500_v0 }
  0x38   : > { %2177 = vmatprep.subr.bf16.mxu0 %v2500_v0  ;;  %2183 = vmatprep.subr.bf16.mxu1 %v2500_v0 }
  0x3d   : > { %2168 = vmatmul.mubr.msk.bf16.vlgmr.msra.gmra.mxu0 %vm254_vm2, %v1979_v31  ;;  %2174 = vmatmul.mubr.msk.bf16.vlgmr.msra.gmra.mxu1 %vm254_vm2, %v1986_v32 }
  0x3e   : > { %2178 = vmatpush3.bf16.msra.mxu0 %v824_v33  ;;  %2184 = vmatpush3.bf16.msra.mxu1 %v879_v34 }
  0x3f   : > { %2179 = vmatprep.mubr.msk.bf16.mxu0 %vm2501_vm1, %v2500_v0  ;;  %2185 = vmatprep.mubr.msk.bf16.mxu1 %vm2501_vm1, %v2500_v0 }
  0x40   : > { %2189 = vmatprep.subr.bf16.mxu0 %v2500_v0  ;;  %2195 = vmatprep.subr.bf16.mxu1 %v2500_v0 }
  0x45   : > { %2180 = vmatmul.mubr.msk.bf16.vlgmr.msra.gmra.mxu0 %vm254_vm2, %v1985_v37  ;;  %2186 = vmatmul.mubr.msk.bf16.vlgmr.msra.gmra.mxu1 %vm254_vm2, %v1993_v38 }
  0x46   : > { %2190 = vmatpush3.bf16.msra.mxu0 %v944_v39  ;;  %2196 = vmatpush3.bf16.msra.mxu1 %v995_v40 }
  0x47   : > { %2191 = vmatprep.mubr.msk.bf16.mxu0 %vm2501_vm1, %v2500_v0  ;;  %2197 = vmatprep.mubr.msk.bf16.mxu1 %vm2501_vm1, %v2500_v0 }
  0x48   : > { %2201 = vmatprep.subr.bf16.mxu0 %v2500_v0  ;;  %2207 = vmatprep.subr.bf16.mxu1 %v2500_v0 }
  0x4d   : > { %2192 = vmatmul.mubr.msk.bf16.vlgmr.msra.gmra.mxu0 %vm254_vm2, %v2000_v43  ;;  %2198 = vmatmul.mubr.msk.bf16.vlgmr.msra.gmra.mxu1 %vm254_vm2, %v1999_v44 }
  0x4e   : > { %2202 = vmatpush3.bf16.msra.mxu0 %v1050_v45  ;;  %2208 = vmatpush3.bf16.msra.mxu1 %v1115_v46 }
  0x4f   : > { %2203 = vmatprep.mubr.msk.bf16.mxu0 %vm2501_vm1, %v2500_v0  ;;  %2209 = vmatprep.mubr.msk.bf16.mxu1 %vm2501_vm1, %v2500_v0 }
  0x50   : > { %2213 = vmatprep.subr.bf16.mxu0 %v2500_v0  ;;  %2219 = vmatprep.subr.bf16.mxu1 %v2500_v0 }
  0x55   : > { %2204 = vmatmul.mubr.msk.bf16.vlgmr.msra.gmra.mxu0 %vm254_vm2, %v2007_v49  ;;  %2210 = vmatmul.mubr.msk.bf16.vlgmr.msra.gmra.mxu1 %vm254_vm2, %v2014_v50 }
  0x56   : > { %2214 = vmatpush3.bf16.msra.mxu0 %v1166_v51  ;;  %2220 = vmatpush3.bf16.msra.mxu1 %v1221_v52 }
  0x57   : > { %2215 = vmatprep.mubr.msk.bf16.mxu0 %vm2501_vm1, %v2500_v0  ;;  %2221 = vmatprep.mubr.msk.bf16.mxu1 %vm2501_vm1, %v2500_v0 }
  0x58   : > { %2225 = vmatprep.subr.bf16.mxu0 %v2500_v0  ;;  %2231 = vmatprep.subr.bf16.mxu1 %v2500_v0 }
  0x5d   : > { %2216 = vmatmul.mubr.msk.bf16.vlgmr.msra.gmra.mxu0 %vm254_vm2, %v2013_v55  ;;  %2222 = vmatmul.mubr.msk.bf16.vlgmr.msra.gmra.mxu1 %vm254_vm2, %v2021_v56 }
  0x5e   : > { %2226 = vmatpush3.bf16.msra.mxu0 %v1286_v57  ;;  %2232 = vmatpush3.bf16.msra.mxu1 %v1337_v58 }
  0x5f   : > { %2227 = vmatprep.mubr.msk.bf16.mxu0 %vm2501_vm1, %v2500_v0  ;;  %2233 = vmatprep.mubr.msk.bf16.mxu1 %vm2501_vm1, %v2500_v0 }
  0x60   : > { %2237 = vmatprep.subr.bf16.mxu0 %v2500_v0  ;;  %2243 = vmatprep.subr.bf16.mxu1 %v2500_v0 }
  0x65   : > { %2228 = vmatmul.mubr.msk.bf16.vlgmr.msra.gmra.mxu0 %vm254_vm2, %v2028_v61  ;;  %2234 = vmatmul.mubr.msk.bf16.vlgmr.msra.gmra.mxu1 %vm254_vm2, %v2027_v62 }
  0x66   : > { %2238 = vmatpush3.bf16.msra.mxu0 %v1392_v63  ;;  %2244 = vmatpush3.bf16.msra.mxu1 %v1457_v1 }
  0x67   : > { %2239 = vmatprep.mubr.msk.bf16.mxu0 %vm2501_vm1, %v2500_v0  ;;  %2245 = vmatprep.mubr.msk.bf16.mxu1 %vm2501_vm1, %v2500_v0 }
  0x68   : > { %2249 = vmatprep.subr.bf16.mxu0 %v2500_v0  ;;  %2255 = vmatprep.subr.bf16.mxu1 %v2500_v0 }
  0x6d   : > { %2240 = vmatmul.mubr.msk.bf16.vlgmr.msra.gmra.mxu0 %vm254_vm2, %v2035_v4  ;;  %2246 = vmatmul.mubr.msk.bf16.vlgmr.msra.gmra.mxu1 %vm254_vm2, %v2042_v5 }
  0x6e   : > { %2250 = vmatpush3.bf16.msra.mxu0 %v1508_v6  ;;  %2256 = vmatpush3.bf16.msra.mxu1 %v1563_v7 }
  0x6f   : > { %2251 = vmatprep.mubr.msk.bf16.mxu0 %vm2501_vm1, %v2500_v0  ;;  %2257 = vmatprep.mubr.msk.bf16.mxu1 %vm2501_vm1, %v2500_v0 }
  0x70   : > { %2261 = vmatprep.subr.mxu0 %v2500_v0  ;;  %2266 = vmatprep.subr.mxu1 %v2500_v0 }
  0x75   : > { %2252 = vmatmul.mubr.msk.bf16.vlgmr.msra.gmra.mxu0 %vm254_vm2, %v2041_v8  ;;  %2258 = vmatmul.mubr.msk.bf16.vlgmr.msra.gmra.mxu1 %vm254_vm2, %v2049_v9 }
  0x76   : > { %2263 = vmatprep.mubr.msk.f32.mxu0 %vm2501_vm1, %v2500_v0  ;;  %2268 = vmatprep.mubr.msk.f32.mxu1 %vm2501_vm1, %v2500_v0 }
  0xdd   : > { %v296_v10 = vpop.f32.mrf.mxu0  ;;  %v347_v11 = vpop.f32.mrf.mxu1 }
  0xde   : > { %v348_v18 = vadd.f32 %v347_v11, %v296_v10 }
  0xdf   : > { %v2121_v12 = vpop.f32.mrf.mxu0  ;;  %v2127_v13 = vpop.f32.mrf.mxu1 }
  0xe1   : > { %v299_v14 = vpop.f32.mrf.mxu0  ;;  %v350_v15 = vpop.f32.mrf.mxu1 }
  0xe3   : > { %v2122_v16 = vpop.f32.mrf.mxu0  ;;  %v2128_v17 = vpop.f32.mrf.mxu1 }
  0xe5   : > { %v403_v19 = vpop.f32.mrf.mxu0  ;;  %v467_v20 = vpop.f32.mrf.mxu1 }
  0xe6   : > { %v2825_v21 = vadd.f32 %v403_v19, %v348_v18 }
  0xe7   : > { %v2133_v22 = vpop.f32.mrf.mxu0  ;;  %v2139_v23 = vpop.f32.mrf.mxu1 }
  0xe8   : > { %v410_v0 = vpack.c.bf16 %v2825_v21, %v2825_v21 }
  0xe9   : > { %v406_v24 = vpop.f32.mrf.mxu0  ;;  %v470_v25 = vpop.f32.mrf.mxu1 }
  0xea   : > { %411 = vst [vmem:[%s2829_s30] sm:$0xf] %v410_v0 }
  0xeb   : > { %v2134_v26 = vpop.f32.mrf.mxu0  ;;  %v2140_v27 = vpop.f32.mrf.mxu1 }
  0xed   : > { %v518_v28 = vpop.f32.mrf.mxu0  ;;  %v573_v29 = vpop.f32.mrf.mxu1 }
  0xee   : > { %v519_v30 = vadd.f32 %v518_v28, %v467_v20 }
  0xef   : > { %v2145_v31 = vpop.f32.mrf.mxu0  ;;  %v2151_v32 = vpop.f32.mrf.mxu1 }
  0xf0   : > { %v2832_v33 = vadd.f32 %v573_v29, %v519_v30 }
  0xf1   : > { %v521_v34 = vpop.f32.mrf.mxu0  ;;  %v576_v35 = vpop.f32.mrf.mxu1 }
  0xf2   : > { %v580_v36 = vpack.c.bf16 %v2832_v33, %v2832_v33 }
  0xf3   : > { %v2146_v37 = vpop.f32.mrf.mxu0  ;;  %v2152_v38 = vpop.f32.mrf.mxu1 }
  0xf4   : > { %1970 = vst [vmem:[%s2829_s30 + $0x4] sm:$0xf] %v580_v36 }
  0xf5   : > { %v638_v39 = vpop.f32.mrf.mxu0  ;;  %v689_v40 = vpop.f32.mrf.mxu1 }
  0xf6   : > { %v690_v47 = vadd.f32 %v689_v40, %v638_v39 }
  0xf7   : > { %v2157_v41 = vpop.f32.mrf.mxu0  ;;  %v2163_v42 = vpop.f32.mrf.mxu1 }
  0xf9   : > { %v641_v43 = vpop.f32.mrf.mxu0  ;;  %v692_v44 = vpop.f32.mrf.mxu1 }
  0xfb   : > { %v2158_v45 = vpop.f32.mrf.mxu0  ;;  %v2164_v46 = vpop.f32.mrf.mxu1 }
  0xfc   : > { %v584_v45 = vmul.f32 %v2832_v33, %v2832_v33 }
  0xfd   : > { %v744_v48 = vpop.f32.mrf.mxu0  ;;  %v809_v49 = vpop.f32.mrf.mxu1 }
  0xfe   : > { %v2837_v50 = vadd.f32 %v744_v48, %v690_v47 }
  0xff   : > { %v2169_v51 = vpop.f32.mrf.mxu0  ;;  %v2175_v52 = vpop.f32.mrf.mxu1 }
 0x100   : > { %v751_v53 = vpack.c.bf16 %v2837_v50, %v2837_v50  ;;  %v583_v51 = vadd.f32 %v2832_v33, %v2825_v21  ;;  %v755_v52 = vmul.f32 %v2837_v50, %v2837_v50 }
 0x101   : > { %v747_v54 = vpop.f32.mrf.mxu0  ;;  %v812_v55 = vpop.f32.mrf.mxu1 }
 0x102   : > { %1984 = vst [vmem:[%s2829_s30 + $0x8] sm:$0xf] %v751_v53 }
 0x103   : > { %v2170_v56 = vpop.f32.mrf.mxu0  ;;  %v2176_v57 = vpop.f32.mrf.mxu1 }
 0x104   : > { %v754_v57 = vadd.f32 %v2837_v50, %v583_v51 }
 0x105   : > { %v860_v58 = vpop.f32.mrf.mxu0  ;;  %v915_v59 = vpop.f32.mrf.mxu1 }
 0x106   : > { %v861_v60 = vadd.f32 %v860_v58, %v809_v49  ;;  %v413_v49 = vmul.f32 %v2825_v21, %v2825_v21 }
 0x107   : > { %v2181_v61 = vpop.f32.mrf.mxu0  ;;  %v2187_v62 = vpop.f32.mrf.mxu1 }
 0x108   : > { %v2842_v63 = vadd.f32 %v915_v59, %v861_v60  ;;  %v585_v56 = vadd.f32 %v584_v45, %v413_v49 }
 0x109   : > { %v863_v1 = vpop.f32.mrf.mxu0  ;;  %v918_v2 = vpop.f32.mrf.mxu1 }
 0x10a   : > { %v922_v3 = vpack.c.bf16 %v2842_v63, %v2842_v63  ;;  %v926_v58 = vmul.f32 %v2842_v63, %v2842_v63  ;;  %v756_v62 = vadd.f32 %v755_v52, %v585_v56  ;;  %v925_v1 = vadd.f32 %v2842_v63, %v754_v57 }
 0x10b   : > { %v2182_v4 = vpop.f32.mrf.mxu0  ;;  %v2188_v5 = vpop.f32.mrf.mxu1 }
 0x10c   : > { %1998 = vst [vmem:[%s2829_s30 + $0xc] sm:$0xf] %v922_v3  ;;  %v927_v3 = vadd.f32 %v926_v58, %v756_v62 }
 0x10d   : > { %v980_v6 = vpop.f32.mrf.mxu0  ;;  %v1031_v7 = vpop.f32.mrf.mxu1 }
 0x10e   : > { %v1032_v14 = vadd.f32 %v1031_v7, %v980_v6 }
 0x10f   : > { %v2193_v8 = vpop.f32.mrf.mxu0  ;;  %v2199_v9 = vpop.f32.mrf.mxu1 }
 0x111   : > { %v983_v10 = vpop.f32.mrf.mxu0  ;;  %v1034_v11 = vpop.f32.mrf.mxu1 }
 0x113   : > { %v2194_v12 = vpop.f32.mrf.mxu0  ;;  %v2200_v13 = vpop.f32.mrf.mxu1 }
 0x115   : > { %v1086_v15 = vpop.f32.mrf.mxu0  ;;  %v1151_v16 = vpop.f32.mrf.mxu1 }
 0x116   : > { %v1092_v17 = vadd.f32 %v1086_v15, %v1032_v14 }
 0x117   : > { %v2205_v18 = vpop.f32.mrf.mxu0  ;;  %v2211_v19 = vpop.f32.mrf.mxu1 }
 0x118   : > { %v1093_v20 = vpack.c.bf16 %v1092_v17, %v1092_v17  ;;  %v1097_v2 = vmul.f32 %v1092_v17, %v1092_v17  ;;  %v1096_v4 = vadd.f32 %v1092_v17, %v925_v1 }
 0x119   : > { %v1089_v22 = vpop.f32.mrf.mxu0  ;;  %v1154_v23 = vpop.f32.mrf.mxu1 }
 0x11a   : > { %2012 = vst [vmem:[%s2829_s30 + $0x10] sm:$0xf] %v1093_v20  ;;  %v1098_v8 = vadd.f32 %v1097_v2, %v927_v3 }
 0x11b   : > { %v2206_v0 = vpop.f32.mrf.mxu0  ;;  %v2212_v24 = vpop.f32.mrf.mxu1 }
 0x11c   : > { %v2502_v24 = vmov 1.0  }
 0x11d   : > { %v1202_v25 = vpop.f32.mrf.mxu0  ;;  %v1257_v26 = vpop.f32.mrf.mxu1 }
 0x11e   : > { %v1203_v27 = vadd.f32 %v1202_v25, %v1151_v16 }
 0x11f   : > { %v2217_v28 = vpop.f32.mrf.mxu0  ;;  %v2223_v29 = vpop.f32.mrf.mxu1 }
 0x120   : > { %v1263_v30 = vadd.f32 %v1257_v26, %v1203_v27 }
 0x121   : > { %v1205_v31 = vpop.f32.mrf.mxu0  ;;  %v1260_v32 = vpop.f32.mrf.mxu1 }
 0x122   : > { %v1264_v34 = vpack.c.bf16 %v1263_v30, %v1263_v30  ;;  %v1268_v5 = vmul.f32 %v1263_v30, %v1263_v30  ;;  %v1267_v50 = vadd.f32 %v1263_v30, %v1096_v4 }
 0x123   : > { %v2218_v35 = vpop.f32.mrf.mxu0  ;;  %v2224_v36 = vpop.f32.mrf.mxu1 }
 0x124   : > { %2026 = vst [vmem:[%s2829_s30 + $0x14] sm:$0xf] %v1264_v34  ;;  %v1269_v13 = vadd.f32 %v1268_v5, %v1098_v8 }
 0x125   : > { %v1322_v37 = vpop.f32.mrf.mxu0  ;;  %v1373_v38 = vpop.f32.mrf.mxu1 }
 0x126   : > { %v1374_v46 = vadd.f32 %v1373_v38, %v1322_v37 }
 0x127   : > { %v2229_v39 = vpop.f32.mrf.mxu0  ;;  %v2235_v40 = vpop.f32.mrf.mxu1 }
 0x129   : > { %v1325_v41 = vpop.f32.mrf.mxu0  ;;  %v1376_v42 = vpop.f32.mrf.mxu1 }
 0x12b   : > { %v2230_v43 = vpop.f32.mrf.mxu0  ;;  %v2236_v44 = vpop.f32.mrf.mxu1 }
 0x12d   : > { %v1428_v47 = vpop.f32.mrf.mxu0  ;;  %v1493_v48 = vpop.f32.mrf.mxu1 }
 0x12e   : > { %v1434_v53 = vadd.f32 %v1428_v47, %v1374_v46 }
 0x12f   : > { %v2241_v54 = vpop.f32.mrf.mxu0  ;;  %v2247_v55 = vpop.f32.mrf.mxu1 }
 0x130   : > { %v1435_v59 = vpack.c.bf16 %v1434_v53, %v1434_v53  ;;  %v1439_v9 = vmul.f32 %v1434_v53, %v1434_v53  ;;  %v1438_v14 = vadd.f32 %v1434_v53, %v1267_v50 }
 0x131   : > { %v1431_v60 = vpop.f32.mrf.mxu0  ;;  %v1496_v61 = vpop.f32.mrf.mxu1 }
 0x132   : > { %2040 = vst [vmem:[%s2829_s30 + $0x18] sm:$0xf] %v1435_v59  ;;  %v1440_v18 = vadd.f32 %v1439_v9, %v1269_v13 }
 0x133   : > { %v2242_v21 = vpop.f32.mrf.mxu0  ;;  %v2248_v33 = vpop.f32.mrf.mxu1 }
 0x135   : > { %v1544_v6 = vpop.f32.mrf.mxu0  ;;  %v1599_v7 = vpop.f32.mrf.mxu1 }
 0x136   : > { %v1545_v10 = vadd.f32 %v1544_v6, %v1493_v48 }
 0x137   : > { %v2253_v11 = vpop.f32.mrf.mxu0  ;;  %v2259_v12 = vpop.f32.mrf.mxu1 }
 0x138   : > { %v1605_v15 = vadd.f32 %v1599_v7, %v1545_v10 }
 0x139   : > { %v1547_v63 = vpop.f32.mrf.mxu0  ;;  %v1602_v16 = vpop.f32.mrf.mxu1 }
 0x13a   : > { %v1606_v17 = vpack.c.bf16 %v1605_v15, %v1605_v15  ;;  %v1609_v19 = vadd.f32 %v1605_v15, %v1438_v14  ;;  %v1610_v20 = vmul.f32 %v1605_v15, %v1605_v15 }
 0x13b   : > { %v2254_v22 = vpop.f32.mrf.mxu0  ;;  %v2260_v23 = vpop.f32.mrf.mxu1 }
 0x13c   : > { %v1611_v0 = vadd.f32 %v1610_v20, %v1440_v18  ;;  %2262 = vmatpush3.msra.mxu0 %v1609_v19  ;;  %2054 = vst [vmem:[%s2829_s30 + $0x1c] sm:$0xf] %v1606_v17 }
 0x13d   : > { %2264 = vmatmul.mubr.msk.f32.vlgmr.msra.gmra.mxu0 %vm1612_vm3, %v2502_v24 }
 0x13e   : > { %2267 = vmatpush3.msra.mxu1 %v1611_v0 }
 0x13f   : > { %2269 = vmatmul.mubr.msk.f32.vlgmr.msra.gmra.mxu1 %vm1612_vm3, %v2502_v24 }
 0x140   : > { %2379 = shalt.err (!%p2376_p5)
}
 0x141   : > { %s2380_s26 = scalar_lea.hbm %s2870_s9, 512  ;;  %s2384_s6 = scalar_lea.hbm %s2991_s2, 1024 }
 0x142   : > { %p2381_p6 = scmp.ne.s32.totalorder %s2870_s9, %s2380_s26  ;;  %p2385_p10 = scmp.lt.s32.totalorder %s2870_s9, %s2991_s2 }
 0x143   : > { %p2386_p11 = scmp.lt.s32.totalorder %s2384_s6, %s2380_s26 }
 0x144   : > { %p2382_p7 = pnand %p2381_p6, %p2575_p4 }
 0x145   : > { %p2387_p12 = por %p2386_p11, %p2385_p10 }
 0x146   : > { %p2383_p9 = pneg %p2382_p7 }
 0x148   : > { %p2388_p13 = pnand %p2387_p12, %p2383_p9 }
 0x14a   : > { %2391 = shalt.err (!%p2388_p13)
}
 0x14b   : > { %s2504_s11 = smov 64   ;;  %s2505_s12 = smov 4  }
 0x14c   : > { %2272 = dma.vmem_to_hbm [thread:$0]  (%p2575_p4), %s2865_s5, 512, %s2870_s9, %s1759_s10, %s2504_s11, %s2504_s11, %s2505_s12  }
 0x14d   : > { %s223_s13 = scalar_lea.vmem [#allocation4], %s2822_s29  ;;  %s2898_s26 = sand.u32 1, %s1938_s21  }
 0x14e   : > { %s1799_s14 = sshll.u32 %s223_s13, 4  ;;  %s2060_s24 = sshll.u32 %s2490_s18, 4  ;;  %s2901_s14 = int_to_ptr.vmem [resolvable:$true] %s1799_s14 }
 0x14f   : > { %s229_s30 = scalar_lea.vmem [#allocation6], %s2822_s29  ;;  %s2909_s22 = scalar_lea.hbm %s2992_s3, %s2060_s24 }
 0x150   : > { %s1813_s6 = sshll.u32 %s229_s30, 4  ;;  %s2916_s18 = scalar_lea.hbm %s2993_s4, %s2060_s24  ;;  %s2911_s6 = int_to_ptr.vmem [resolvable:$true] %s1813_s6 }
 0x151   : > { %s1764_s9 = scalar_lea.sflag [#allocation5], %s2898_s26  ;;  %s2392_s10 = scalar_lea.vmem %s2901_s14, 16 }
 0x152   : > { %p2393_p0 = scmp.ne.s32.totalorder %s2901_s14, %s2392_s10  ;;  %s2506_s11 = smov [#allocation4]  }
 0x153   : > { %s2396_s12 = sshll.u32 %s2506_s11, 4  ;;  %s2397_s12 = int_to_ptr.vmem [resolvable:$false] %s2396_s12 }
 0x154   : > { %p2394_p1 = pnand %p2393_p0, %p2575_p4  ;;  %s2398_s7 = scalar_lea.vmem %s2397_s12, 32 }
 0x155   : > { %p2399_p3 = scmp.lt.s32.totalorder %s2901_s14, %s2397_s12  ;;  %p2400_p5 = scmp.lt.s32.totalorder %s2398_s7, %s2392_s10 }
 0x156   : > { %p2395_p2 = pneg %p2394_p1 }
 0x157   : > { %p2401_p6 = por %p2400_p5, %p2399_p3 }
 0x159   : > { %p2402_p7 = pnand %p2401_p6, %p2395_p2 }
 0x1fd   : > { %v1682_v25 = vpop.f32.mrf.mxu0 }
 0x1fe   : > { %1686 = vst [vmem:[%s223_s13] sm:$0x1] %v1682_v25 }
 0x1ff   : > { %v1753_v26 = vpop.f32.mrf.mxu1  ;;  %v2265_v27 = vpop.f32.mrf.mxu0 }
 0x200   : > { %2405 = shalt.err (!%p2402_p7)
}
 0x201   : > { %s2406_s13 = scalar_lea.hbm %s2909_s22, 16  ;;  %s2410_s21 = scalar_lea.hbm %s2992_s3, 32 }
 0x202   : > { %p2407_p9 = scmp.ne.s32.totalorder %s2909_s22, %s2406_s13  ;;  %p2411_p12 = scmp.lt.s32.totalorder %s2909_s22, %s2992_s3 }
 0x203   : > { %p2412_p13 = scmp.lt.s32.totalorder %s2410_s21, %s2406_s13 }
 0x204   : > { %p2408_p10 = pnand %p2407_p9, %p2575_p4 }
 0x205   : > { %p2413_p0 = por %p2412_p13, %p2411_p12 }
 0x206   : > { %p2409_p11 = pneg %p2408_p10 }
 0x208   : > { %p2414_p1 = pnand %p2413_p0, %p2409_p11 }
 0x20a   : > { %2417 = shalt.err (!%p2414_p1)
}
 0x20b   : > { %2273 = dma.vmem_to_hbm [thread:$0]  (%p2575_p4), %s2901_s14, 16, %s2909_s22, %s1764_s9   ;;  %1757 = vst [vmem:[%s229_s30] sm:$0x1] %v1753_v26  ;;  %v2270_v28 = vpop.f32.mrf.mxu1 }
 0x20c   : > { %s2418_s10 = scalar_lea.vmem %s2911_s6, 16  ;;  %s2507_s12 = smov [#allocation6]  }
 0x20d   : > { %p2419_p2 = scmp.ne.s32.totalorder %s2911_s6, %s2418_s10  ;;  %s2422_s7 = sshll.u32 %s2507_s12, 4  ;;  %s2423_s7 = int_to_ptr.vmem [resolvable:$false] %s2422_s7 }
 0x20e   : > { %s2424_s13 = scalar_lea.vmem %s2423_s7, 32  ;;  %p2425_p6 = scmp.lt.s32.totalorder %s2911_s6, %s2423_s7 }
 0x20f   : > { %p2420_p3 = pnand %p2419_p2, %p2575_p4  ;;  %p2426_p7 = scmp.lt.s32.totalorder %s2424_s13, %s2418_s10 }
 0x211   : > { %p2421_p5 = pneg %p2420_p3  ;;  %p2427_p9 = por %p2426_p7, %p2425_p6 }
 0x213   : > { %p2428_p10 = pnand %p2427_p9, %p2421_p5 }
 0x215   : > { %2431 = shalt.err (!%p2428_p10)
}
 0x216   : > { %s2432_s22 = scalar_lea.hbm %s2916_s18, 16  ;;  %s2436_s30 = scalar_lea.hbm %s2993_s4, 32 }
 0x217   : > { %p2433_p11 = scmp.ne.s32.totalorder %s2916_s18, %s2432_s22  ;;  %p2437_p0 = scmp.lt.s32.totalorder %s2916_s18, %s2993_s4 }
 0x218   : > { %p2438_p1 = scmp.lt.s32.totalorder %s2436_s30, %s2432_s22 }
 0x219   : > { %p2434_p12 = pnand %p2433_p11, %p2575_p4 }
 0x21a   : > { %p2439_p2 = por %p2438_p1, %p2437_p0 }
 0x21b   : > { %p2435_p13 = pneg %p2434_p12 }
 0x21d   : > { %p2440_p3 = pnand %p2439_p2, %p2435_p13 }
 0x21f   : > { %2443 = shalt.err (!%p2440_p3)
}
 0x220   : > { %2274 = dma.vmem_to_hbm [thread:$0]  (%p2575_p4), %s2911_s6, 16, %s2916_s18, %s1764_s9  }
 0x221 PF: > { %p2288_p5 = scmp.ge.s32.totalorder %s2498_s20, 2  ;;  %s1825_s21 = sand.u32 1, %s2478_s15  }
 0x222   : > { %s1826_s5 = scalar_lea.sflag [#allocation3], %s1825_s21 }
 0x223   : > { %p2279_p6 = pnand %p2288_p5, %p2584_p8 }
 0x225   : > { %p2280_p7 = pneg %p2279_p6 }
 0x227   : > { %2469 = dma.done.wait (%p2280_p7), %s1826_s5, 512  }
 0x228   : > { %2471 = vsyncadd (%p2280_p7), %s1826_s5, 4294966784  ;;  %s2997_s11 = sadd.s32 4294967294, %s2498_s20  }
 0x229   : > { %s1834_s25 = sand.u32 1, %s2997_s11  }
 0x22a   : > { %s1835_s10 = scalar_lea.sflag [#allocation5], %s1834_s25 }
 0x22b   : > { %2473 = dma.done.wait (%p2280_p7), %s1835_s10, 32  }
 0x22c   : > { %2475 = vsyncadd (%p2280_p7), %s1835_s10, 4294967264  ;;  %s21_s20 = sadd.s32 1, %s2498_s20   ;;  %s2998_s15 = smov %s2482_s16 }
 0x22d   : > { %p18_p4 = scmp.ge.s32.totalorder %s21_s20, 4   ;;  %s2999_s16 = smov %s2486_s17 }
 0x22e   : > { %s3000_s17 = smov %s2590_s28  ;;  %s3001_s18 = smov %s2494_s19 }
 0x22f   : > { %s3002_s19 = smov %s3004_s23  ;;  %20 = sbr.rel (!%p18_p4) target bundleno = 6 (0x6), region = 120 }
 0x234   :  { %1847 = vsyncpa [#allocation3], 1 }
 0x235   :  { %1849 = vsyncpa [#allocation3 + $0x1], 1 }
 0x236   :  { %1850 = vsyncpa [#allocation5], 1 }
 0x237   :  { %1852 = vsyncpa [#allocation5 + $0x1], 1 }

</bundles_post_ra>
